<compile_context>
chip_gen: v6e
topology: v6e:2x2x1
jax: 0.10.0
libtpu: 0.0.40
codegen_flags: <defaults>
</compile_context>

<pallas_src>
import functools

import jax
import jax.numpy as jnp
from jax.experimental import pallas as pl
from jax.experimental.pallas import tpu as pltpu


# ----------------------------- kernel -------------------------------------

def clip_embedding_kernel(tok_ref,     # SMEM (B*S,) int32   -- scalar prefetch
                          table_ref,   # HBM  (V, D)         -- memory_space=pl.ANY
                          pos_ref,     # VMEM (S, D)         -- resident (constant index)
                          out_ref,     # VMEM (1, S, D)
                          rows_ref,    # VMEM (2, S, D) scratch -- double-buffered rows
                          sems,        # DMA semaphores (2, S)
                          *, seq_len):
    b = pl.program_id(0)
    nb = pl.num_programs(0)

    def issue_gathers(step, slot):
        base = step * seq_len
        for s in range(seq_len):
            pltpu.make_async_copy(
                table_ref.at[tok_ref[base + s]],   # (D,) row of the vocab table
                rows_ref.at[slot, s],              # (D,) destination row
                sems.at[slot, s],
            ).start()

    # Prologue: the very first grid step issues its own gathers.
    @pl.when(b == 0)
    def _():
        issue_gathers(b, 0)

    # Prefetch the *next* step's rows into the other slot before waiting, so
    # its HBM latency is hidden behind this step's wait + add + writeback.
    @pl.when(b + 1 < nb)
    def _():
        issue_gathers(b + 1, (b + 1) % 2)

    # Wait for this step's rows.  A wait only needs the semaphore and the
    # destination-window size, so use a constant src row: no SMEM token loads
    # or dynamic address computation in the wait path.
    slot = b % 2
    for s in range(seq_len):
        pltpu.make_async_copy(
            table_ref.at[0],
            rows_ref.at[slot, s],
            sems.at[slot, s],
        ).wait()

    # Add positional embedding and write one dense (S, D) output tile.
    out_ref[0] = (rows_ref[slot] + pos_ref[...]).astype(out_ref.dtype)


# ----------------------------- wrapper -------------------------------------

def clip_embedding(tokens, token_table, position_embedding):
    """tokens: (B, S) int; token_table: (V, D); position_embedding: (S, D)."""
    B, S = tokens.shape
    V, D = token_table.shape
    assert position_embedding.shape == (S, D)

    # Clamp ids so a bad token can never produce an out-of-bounds gather DMA,
    # and flatten to 1-D to keep the SMEM scalar-prefetch array compact.
    tok_flat = jnp.clip(tokens.astype(jnp.int32), 0, V - 1).reshape(-1)

    grid_spec = pltpu.PrefetchScalarGridSpec(
        num_scalar_prefetch=1,              # token ids land in SMEM before the grid runs
        grid=(B,),
        in_specs=[
            pl.BlockSpec(memory_space=pl.ANY),              # vocab table: raw HBM ref
            pl.BlockSpec((S, D), lambda b, toks: (0, 0)),   # positional emb: resident
        ],
        out_specs=pl.BlockSpec((1, S, D), lambda b, toks: (b, 0, 0)),
        scratch_shapes=[
            pltpu.VMEM((2, S, D), token_table.dtype),       # double-buffered gathered rows
            pltpu.SemaphoreType.DMA((2, S)),                # one sem per in-flight row DMA
        ],
    )

    return pl.pallas_call(
        functools.partial(clip_embedding_kernel, seq_len=S),
        out_shape=jax.ShapeDtypeStruct((B, S, D), token_table.dtype),
        grid_spec=grid_spec,
        compiler_params=pltpu.CompilerParams(
            # The batch axis carries manual-DMA state (cross-step prefetch),
            # so it must execute sequentially.
            dimension_semantics=("arbitrary",)),
    )(tok_flat, token_table, position_embedding)


# ----------------------------- main -----------------------------------------

if __name__ == "__main__":
    # Small shapes consistent with the module: batch=2, seq (n_token)=8,
    # n_embd=128 (lane-dense last dim; real CLIP uses 768), n_vocab=1000.
    B, S, D, V = 2, 8, 128, 1000

    key = jax.random.PRNGKey(0)
    k_tok, k_tab, k_pos = jax.random.split(key, 3)

    tokens = jax.random.randint(k_tok, (B, S), 0, V, dtype=jnp.int32)
    token_table = 0.02 * jax.random.normal(k_tab, (V, D), jnp.float32)
    # The module initializes position_embedding to zeros; use non-zero values
    # here so the correctness check actually exercises the add.
    position_embedding = 0.02 * jax.random.normal(k_pos, (S, D), jnp.float32)

    out = clip_embedding(tokens, token_table, position_embedding)
    out = jax.block_until_ready(out)

    ref = token_table[tokens] + position_embedding[None]
    assert out.shape == (B, S, D)
    assert jnp.allclose(out, ref, atol=1e-6, rtol=1e-6), "mismatch vs reference"

    print("KERNEL_OK")
</pallas_src>

<mosaic_0001>
module attributes {stable_mosaic.version = 11 : i64} {
  func.func @clip_embedding_kernel(%arg0: i32, %arg1: memref<16xi32, #tpu.memory_space<smem>>, %arg2: memref<1000x128xf32, #tpu.memory_space<any>>, %arg3: memref<8x128xf32, #tpu.memory_space<vmem>>, %arg4: memref<1x8x128xf32, #tpu.memory_space<vmem>>, %arg5: memref<2x8x128xf32, #tpu.memory_space<vmem>>, %arg6: memref<2x8x!tpu.dma_semaphore, #tpu.memory_space<semaphore_mem>>) attributes {dimension_semantics = [#tpu.dimension_semantics<arbitrary>], iteration_bounds = array<i64: 2>, scalar_prefetch = 1 : i64, scratch_operands = 2 : i64, tpu.core_type = #tpu.core_type<tc>, window_params = [{}, {pipeline_mode = #tpu.pipeline_mode<synchronous>, transform_indices = @transform_1, window_bounds = array<i64: 8, 128>}, {transform_indices = @transform_2, window_bounds = array<i64: 1, 8, 128>}]} {
    %c0_i32 = arith.constant 0 : i32
    %0 = arith.cmpi eq, %arg0, %c0_i32 : i32
    %1 = arith.extui %0 : i1 to i32
    %c0_i32_0 = arith.constant 0 : i32
    %2 = arith.cmpi ne, %1, %c0_i32_0 : i32
    scf.if %2 {
      %c8_i32 = arith.constant 8 : i32
      %73 = arith.muli %arg0, %c8_i32 : i32
      %c0_i32_49 = arith.constant 0 : i32
      %74 = arith.addi %73, %c0_i32_49 : i32
      %75 = arith.index_cast %74 : i32 to index
      %76 = memref.load %arg1[%75] : memref<16xi32, #tpu.memory_space<smem>>
      %c0_i32_50 = arith.constant 0 : i32
      %c0_i32_51 = arith.constant 0 : i32
      %c0_i32_52 = arith.constant 0 : i32
      %c0_i32_53 = arith.constant 0 : i32
      %c0_i32_54 = arith.constant 0 : i32
      %77 = tpu.memref_slice %arg2[%76, %c0_i32_54] : memref<1000x128xf32, #tpu.memory_space<any>> -> memref<1x128xf32, #tpu.memory_space<any>>
      %78 = tpu.memref_squeeze %77 : memref<1x128xf32, #tpu.memory_space<any>> -> memref<128xf32, #tpu.memory_space<any>>
      %c0_i32_55 = arith.constant 0 : i32
      %79 = tpu.memref_slice %arg5[%c0_i32_50, %c0_i32_51, %c0_i32_55] : memref<2x8x128xf32, #tpu.memory_space<vmem>> -> memref<1x1x128xf32, #tpu.memory_space<vmem>>
      %80 = tpu.memref_squeeze %79 : memref<1x1x128xf32, #tpu.memory_space<vmem>> -> memref<128xf32, #tpu.memory_space<vmem>>
      %81 = tpu.memref_slice %arg6[%c0_i32_52, %c0_i32_53] : memref<2x8x!tpu.dma_semaphore, #tpu.memory_space<semaphore_mem>> -> memref<1x1x!tpu.dma_semaphore, #tpu.memory_space<semaphore_mem>>
      %82 = tpu.memref_squeeze %81 : memref<1x1x!tpu.dma_semaphore, #tpu.memory_space<semaphore_mem>> -> memref<!tpu.dma_semaphore, #tpu.memory_space<semaphore_mem>>
      tpu.enqueue_dma source(%78 : memref<128xf32, #tpu.memory_space<any>>) target(%80 : memref<128xf32, #tpu.memory_space<vmem>>) target_semaphore(%82 : memref<!tpu.dma_semaphore, #tpu.memory_space<semaphore_mem>>)
      %c1_i32_56 = arith.constant 1 : i32
      %83 = arith.addi %73, %c1_i32_56 : i32
      %84 = arith.index_cast %83 : i32 to index
      %85 = memref.load %arg1[%84] : memref<16xi32, #tpu.memory_space<smem>>
      %c0_i32_57 = arith.constant 0 : i32
      %c1_i32_58 = arith.constant 1 : i32
      %c0_i32_59 = arith.constant 0 : i32
      %c1_i32_60 = arith.constant 1 : i32
      %c0_i32_61 = arith.constant 0 : i32
      %86 = tpu.memref_slice %arg2[%85, %c0_i32_61] : memref<1000x128xf32, #tpu.memory_space<any>> -> memref<1x128xf32, #tpu.memory_space<any>>
      %87 = tpu.memref_squeeze %86 : memref<1x128xf32, #tpu.memory_space<any>> -> memref<128xf32, #tpu.memory_space<any>>
      %c0_i32_62 = arith.constant 0 : i32
      %88 = tpu.memref_slice %arg5[%c0_i32_57, %c1_i32_58, %c0_i32_62] : memref<2x8x128xf32, #tpu.memory_space<vmem>> -> memref<1x1x128xf32, #tpu.memory_space<vmem>>
      %89 = tpu.memref_squeeze %88 : memref<1x1x128xf32, #tpu.memory_space<vmem>> -> memref<128xf32, #tpu.memory_space<vmem>>
      %90 = tpu.memref_slice %arg6[%c0_i32_59, %c1_i32_60] : memref<2x8x!tpu.dma_semaphore, #tpu.memory_space<semaphore_mem>> -> memref<1x1x!tpu.dma_semaphore, #tpu.memory_space<semaphore_mem>>
      %91 = tpu.memref_squeeze %90 : memref<1x1x!tpu.dma_semaphore, #tpu.memory_space<semaphore_mem>> -> memref<!tpu.dma_semaphore, #tpu.memory_space<semaphore_mem>>
      tpu.enqueue_dma source(%87 : memref<128xf32, #tpu.memory_space<any>>) target(%89 : memref<128xf32, #tpu.memory_space<vmem>>) target_semaphore(%91 : memref<!tpu.dma_semaphore, #tpu.memory_space<semaphore_mem>>)
      %c2_i32_63 = arith.constant 2 : i32
      %92 = arith.addi %73, %c2_i32_63 : i32
      %93 = arith.index_cast %92 : i32 to index
      %94 = memref.load %arg1[%93] : memref<16xi32, #tpu.memory_space<smem>>
      %c0_i32_64 = arith.constant 0 : i32
      %c2_i32_65 = arith.constant 2 : i32
      %c0_i32_66 = arith.constant 0 : i32
      %c2_i32_67 = arith.constant 2 : i32
      %c0_i32_68 = arith.constant 0 : i32
      %95 = tpu.memref_slice %arg2[%94, %c0_i32_68] : memref<1000x128xf32, #tpu.memory_space<any>> -> memref<1x128xf32, #tpu.memory_space<any>>
      %96 = tpu.memref_squeeze %95 : memref<1x128xf32, #tpu.memory_space<any>> -> memref<128xf32, #tpu.memory_space<any>>
      %c0_i32_69 = arith.constant 0 : i32
      %97 = tpu.memref_slice %arg5[%c0_i32_64, %c2_i32_65, %c0_i32_69] : memref<2x8x128xf32, #tpu.memory_space<vmem>> -> memref<1x1x128xf32, #tpu.memory_space<vmem>>
      %98 = tpu.memref_squeeze %97 : memref<1x1x128xf32, #tpu.memory_space<vmem>> -> memref<128xf32, #tpu.memory_space<vmem>>
      %99 = tpu.memref_slice %arg6[%c0_i32_66, %c2_i32_67] : memref<2x8x!tpu.dma_semaphore, #tpu.memory_space<semaphore_mem>> -> memref<1x1x!tpu.dma_semaphore, #tpu.memory_space<semaphore_mem>>
      %100 = tpu.memref_squeeze %99 : memref<1x1x!tpu.dma_semaphore, #tpu.memory_space<semaphore_mem>> -> memref<!tpu.dma_semaphore, #tpu.memory_space<semaphore_mem>>
      tpu.enqueue_dma source(%96 : memref<128xf32, #tpu.memory_space<any>>) target(%98 : memref<128xf32, #tpu.memory_space<vmem>>) target_semaphore(%100 : memref<!tpu.dma_semaphore, #tpu.memory_space<semaphore_mem>>)
      %c3_i32_70 = arith.constant 3 : i32
      %101 = arith.addi %73, %c3_i32_70 : i32
      %102 = arith.index_cast %101 : i32 to index
      %103 = memref.load %arg1[%102] : memref<16xi32, #tpu.memory_space<smem>>
      %c0_i32_71 = arith.constant 0 : i32
      %c3_i32_72 = arith.constant 3 : i32
      %c0_i32_73 = arith.constant 0 : i32
      %c3_i32_74 = arith.constant 3 : i32
      %c0_i32_75 = arith.constant 0 : i32
      %104 = tpu.memref_slice %arg2[%103, %c0_i32_75] : memref<1000x128xf32, #tpu.memory_space<any>> -> memref<1x128xf32, #tpu.memory_space<any>>
      %105 = tpu.memref_squeeze %104 : memref<1x128xf32, #tpu.memory_space<any>> -> memref<128xf32, #tpu.memory_space<any>>
      %c0_i32_76 = arith.constant 0 : i32
      %106 = tpu.memref_slice %arg5[%c0_i32_71, %c3_i32_72, %c0_i32_76] : memref<2x8x128xf32, #tpu.memory_space<vmem>> -> memref<1x1x128xf32, #tpu.memory_space<vmem>>
      %107 = tpu.memref_squeeze %106 : memref<1x1x128xf32, #tpu.memory_space<vmem>> -> memref<128xf32, #tpu.memory_space<vmem>>
      %108 = tpu.memref_slice %arg6[%c0_i32_73, %c3_i32_74] : memref<2x8x!tpu.dma_semaphore, #tpu.memory_space<semaphore_mem>> -> memref<1x1x!tpu.dma_semaphore, #tpu.memory_space<semaphore_mem>>
      %109 = tpu.memref_squeeze %108 : memref<1x1x!tpu.dma_semaphore, #tpu.memory_space<semaphore_mem>> -> memref<!tpu.dma_semaphore, #tpu.memory_space<semaphore_mem>>
      tpu.enqueue_dma source(%105 : memref<128xf32, #tpu.memory_space<any>>) target(%107 : memref<128xf32, #tpu.memory_space<vmem>>) target_semaphore(%109 : memref<!tpu.dma_semaphore, #tpu.memory_space<semaphore_mem>>)
      %c4_i32_77 = arith.constant 4 : i32
      %110 = arith.addi %73, %c4_i32_77 : i32
      %111 = arith.index_cast %110 : i32 to index
      %112 = memref.load %arg1[%111] : memref<16xi32, #tpu.memory_space<smem>>
      %c0_i32_78 = arith.constant 0 : i32
      %c4_i32_79 = arith.constant 4 : i32
      %c0_i32_80 = arith.constant 0 : i32
      %c4_i32_81 = arith.constant 4 : i32
      %c0_i32_82 = arith.constant 0 : i32
      %113 = tpu.memref_slice %arg2[%112, %c0_i32_82] : memref<1000x128xf32, #tpu.memory_space<any>> -> memref<1x128xf32, #tpu.memory_space<any>>
      %114 = tpu.memref_squeeze %113 : memref<1x128xf32, #tpu.memory_space<any>> -> memref<128xf32, #tpu.memory_space<any>>
      %c0_i32_83 = arith.constant 0 : i32
      %115 = tpu.memref_slice %arg5[%c0_i32_78, %c4_i32_79, %c0_i32_83] : memref<2x8x128xf32, #tpu.memory_space<vmem>> -> memref<1x1x128xf32, #tpu.memory_space<vmem>>
      %116 = tpu.memref_squeeze %115 : memref<1x1x128xf32, #tpu.memory_space<vmem>> -> memref<128xf32, #tpu.memory_space<vmem>>
      %117 = tpu.memref_slice %arg6[%c0_i32_80, %c4_i32_81] : memref<2x8x!tpu.dma_semaphore, #tpu.memory_space<semaphore_mem>> -> memref<1x1x!tpu.dma_semaphore, #tpu.memory_space<semaphore_mem>>
      %118 = tpu.memref_squeeze %117 : memref<1x1x!tpu.dma_semaphore, #tpu.memory_space<semaphore_mem>> -> memref<!tpu.dma_semaphore, #tpu.memory_space<semaphore_mem>>
      tpu.enqueue_dma source(%114 : memref<128xf32, #tpu.memory_space<any>>) target(%116 : memref<128xf32, #tpu.memory_space<vmem>>) target_semaphore(%118 : memref<!tpu.dma_semaphore, #tpu.memory_space<semaphore_mem>>)
      %c5_i32_84 = arith.constant 5 : i32
      %119 = arith.addi %73, %c5_i32_84 : i32
      %120 = arith.index_cast %119 : i32 to index
      %121 = memref.load %arg1[%120] : memref<16xi32, #tpu.memory_space<smem>>
      %c0_i32_85 = arith.constant 0 : i32
      %c5_i32_86 = arith.constant 5 : i32
      %c0_i32_87 = arith.constant 0 : i32
      %c5_i32_88 = arith.constant 5 : i32
      %c0_i32_89 = arith.constant 0 : i32
      %122 = tpu.memref_slice %arg2[%121, %c0_i32_89] : memref<1000x128xf32, #tpu.memory_space<any>> -> memref<1x128xf32, #tpu.memory_space<any>>
      %123 = tpu.memref_squeeze %122 : memref<1x128xf32, #tpu.memory_space<any>> -> memref<128xf32, #tpu.memory_space<any>>
      %c0_i32_90 = arith.constant 0 : i32
      %124 = tpu.memref_slice %arg5[%c0_i32_85, %c5_i32_86, %c0_i32_90] : memref<2x8x128xf32, #tpu.memory_space<vmem>> -> memref<1x1x128xf32, #tpu.memory_space<vmem>>
      %125 = tpu.memref_squeeze %124 : memref<1x1x128xf32, #tpu.memory_space<vmem>> -> memref<128xf32, #tpu.memory_space<vmem>>
      %126 = tpu.memref_slice %arg6[%c0_i32_87, %c5_i32_88] : memref<2x8x!tpu.dma_semaphore, #tpu.memory_space<semaphore_mem>> -> memref<1x1x!tpu.dma_semaphore, #tpu.memory_space<semaphore_mem>>
      %127 = tpu.memref_squeeze %126 : memref<1x1x!tpu.dma_semaphore, #tpu.memory_space<semaphore_mem>> -> memref<!tpu.dma_semaphore, #tpu.memory_space<semaphore_mem>>
      tpu.enqueue_dma source(%123 : memref<128xf32, #tpu.memory_space<any>>) target(%125 : memref<128xf32, #tpu.memory_space<vmem>>) target_semaphore(%127 : memref<!tpu.dma_semaphore, #tpu.memory_space<semaphore_mem>>)
      %c6_i32_91 = arith.constant 6 : i32
      %128 = arith.addi %73, %c6_i32_91 : i32
      %129 = arith.index_cast %128 : i32 to index
      %130 = memref.load %arg1[%129] : memref<16xi32, #tpu.memory_space<smem>>
      %c0_i32_92 = arith.constant 0 : i32
      %c6_i32_93 = arith.constant 6 : i32
      %c0_i32_94 = arith.constant 0 : i32
      %c6_i32_95 = arith.constant 6 : i32
      %c0_i32_96 = arith.constant 0 : i32
      %131 = tpu.memref_slice %arg2[%130, %c0_i32_96] : memref<1000x128xf32, #tpu.memory_space<any>> -> memref<1x128xf32, #tpu.memory_space<any>>
      %132 = tpu.memref_squeeze %131 : memref<1x128xf32, #tpu.memory_space<any>> -> memref<128xf32, #tpu.memory_space<any>>
      %c0_i32_97 = arith.constant 0 : i32
      %133 = tpu.memref_slice %arg5[%c0_i32_92, %c6_i32_93, %c0_i32_97] : memref<2x8x128xf32, #tpu.memory_space<vmem>> -> memref<1x1x128xf32, #tpu.memory_space<vmem>>
      %134 = tpu.memref_squeeze %133 : memref<1x1x128xf32, #tpu.memory_space<vmem>> -> memref<128xf32, #tpu.memory_space<vmem>>
      %135 = tpu.memref_slice %arg6[%c0_i32_94, %c6_i32_95] : memref<2x8x!tpu.dma_semaphore, #tpu.memory_space<semaphore_mem>> -> memref<1x1x!tpu.dma_semaphore, #tpu.memory_space<semaphore_mem>>
      %136 = tpu.memref_squeeze %135 : memref<1x1x!tpu.dma_semaphore, #tpu.memory_space<semaphore_mem>> -> memref<!tpu.dma_semaphore, #tpu.memory_space<semaphore_mem>>
      tpu.enqueue_dma source(%132 : memref<128xf32, #tpu.memory_space<any>>) target(%134 : memref<128xf32, #tpu.memory_space<vmem>>) target_semaphore(%136 : memref<!tpu.dma_semaphore, #tpu.memory_space<semaphore_mem>>)
      %c7_i32_98 = arith.constant 7 : i32
      %137 = arith.addi %73, %c7_i32_98 : i32
      %138 = arith.index_cast %137 : i32 to index
      %139 = memref.load %arg1[%138] : memref<16xi32, #tpu.memory_space<smem>>
      %c0_i32_99 = arith.constant 0 : i32
      %c7_i32_100 = arith.constant 7 : i32
      %c0_i32_101 = arith.constant 0 : i32
      %c7_i32_102 = arith.constant 7 : i32
      %c0_i32_103 = arith.constant 0 : i32
      %140 = tpu.memref_slice %arg2[%139, %c0_i32_103] : memref<1000x128xf32, #tpu.memory_space<any>> -> memref<1x128xf32, #tpu.memory_space<any>>
      %141 = tpu.memref_squeeze %140 : memref<1x128xf32, #tpu.memory_space<any>> -> memref<128xf32, #tpu.memory_space<any>>
      %c0_i32_104 = arith.constant 0 : i32
      %142 = tpu.memref_slice %arg5[%c0_i32_99, %c7_i32_100, %c0_i32_104] : memref<2x8x128xf32, #tpu.memory_space<vmem>> -> memref<1x1x128xf32, #tpu.memory_space<vmem>>
      %143 = tpu.memref_squeeze %142 : memref<1x1x128xf32, #tpu.memory_space<vmem>> -> memref<128xf32, #tpu.memory_space<vmem>>
      %144 = tpu.memref_slice %arg6[%c0_i32_101, %c7_i32_102] : memref<2x8x!tpu.dma_semaphore, #tpu.memory_space<semaphore_mem>> -> memref<1x1x!tpu.dma_semaphore, #tpu.memory_space<semaphore_mem>>
      %145 = tpu.memref_squeeze %144 : memref<1x1x!tpu.dma_semaphore, #tpu.memory_space<semaphore_mem>> -> memref<!tpu.dma_semaphore, #tpu.memory_space<semaphore_mem>>
      tpu.enqueue_dma source(%141 : memref<128xf32, #tpu.memory_space<any>>) target(%143 : memref<128xf32, #tpu.memory_space<vmem>>) target_semaphore(%145 : memref<!tpu.dma_semaphore, #tpu.memory_space<semaphore_mem>>)
    } else {
    }
    %c1_i32 = arith.constant 1 : i32
    %3 = arith.addi %arg0, %c1_i32 : i32
    %c2_i32 = arith.constant 2 : i32
    %4 = arith.cmpi slt, %3, %c2_i32 : i32
    %5 = arith.extui %4 : i1 to i32
    %c0_i32_1 = arith.constant 0 : i32
    %6 = arith.cmpi ne, %5, %c0_i32_1 : i32
    scf.if %6 {
      %c1_i32_49 = arith.constant 1 : i32
      %73 = arith.addi %arg0, %c1_i32_49 : i32
      %c1_i32_50 = arith.constant 1 : i32
      %74 = arith.addi %arg0, %c1_i32_50 : i32
      %c2_i32_51 = arith.constant 2 : i32
      %c0_i32_52 = arith.constant 0 : i32
      %75 = arith.cmpi eq, %c2_i32_51, %c0_i32_52 : i32
      %c1_i32_53 = arith.constant 1 : i32
      %76 = arith.select %75, %c1_i32_53, %c2_i32_51 : i32
      %77 = arith.remsi %74, %76 : i32
      %c0_i32_54 = arith.constant 0 : i32
      %78 = arith.cmpi ne, %77, %c0_i32_54 : i32
      %c0_i32_55 = arith.constant 0 : i32
      %79 = arith.cmpi slt, %77, %c0_i32_55 : i32
      %c0_i32_56 = arith.constant 0 : i32
      %80 = arith.cmpi slt, %76, %c0_i32_56 : i32
      %81 = arith.xori %79, %80 : i1
      %82 = arith.andi %81, %78 : i1
      %83 = arith.addi %77, %76 : i32
      %84 = arith.select %82, %83, %77 : i32
      %c8_i32 = arith.constant 8 : i32
      %85 = arith.muli %73, %c8_i32 : i32
      %c0_i32_57 = arith.constant 0 : i32
      %86 = arith.addi %85, %c0_i32_57 : i32
      %87 = arith.index_cast %86 : i32 to index
      %88 = memref.load %arg1[%87] : memref<16xi32, #tpu.memory_space<smem>>
      %c0_i32_58 = arith.constant 0 : i32
      %c0_i32_59 = arith.constant 0 : i32
      %c0_i32_60 = arith.constant 0 : i32
      %89 = tpu.memref_slice %arg2[%88, %c0_i32_60] : memref<1000x128xf32, #tpu.memory_space<any>> -> memref<1x128xf32, #tpu.memory_space<any>>
      %90 = tpu.memref_squeeze %89 : memref<1x128xf32, #tpu.memory_space<any>> -> memref<128xf32, #tpu.memory_space<any>>
      %c0_i32_61 = arith.constant 0 : i32
      %91 = tpu.memref_slice %arg5[%84, %c0_i32_58, %c0_i32_61] : memref<2x8x128xf32, #tpu.memory_space<vmem>> -> memref<1x1x128xf32, #tpu.memory_space<vmem>>
      %92 = tpu.memref_squeeze %91 : memref<1x1x128xf32, #tpu.memory_space<vmem>> -> memref<128xf32, #tpu.memory_space<vmem>>
      %93 = tpu.memref_slice %arg6[%84, %c0_i32_59] : memref<2x8x!tpu.dma_semaphore, #tpu.memory_space<semaphore_mem>> -> memref<1x1x!tpu.dma_semaphore, #tpu.memory_space<semaphore_mem>>
      %94 = tpu.memref_squeeze %93 : memref<1x1x!tpu.dma_semaphore, #tpu.memory_space<semaphore_mem>> -> memref<!tpu.dma_semaphore, #tpu.memory_space<semaphore_mem>>
      tpu.enqueue_dma source(%90 : memref<128xf32, #tpu.memory_space<any>>) target(%92 : memref<128xf32, #tpu.memory_space<vmem>>) target_semaphore(%94 : memref<!tpu.dma_semaphore, #tpu.memory_space<semaphore_mem>>)
      %c1_i32_62 = arith.constant 1 : i32
      %95 = arith.addi %85, %c1_i32_62 : i32
      %96 = arith.index_cast %95 : i32 to index
      %97 = memref.load %arg1[%96] : memref<16xi32, #tpu.memory_space<smem>>
      %c1_i32_63 = arith.constant 1 : i32
      %c1_i32_64 = arith.constant 1 : i32
      %c0_i32_65 = arith.constant 0 : i32
      %98 = tpu.memref_slice %arg2[%97, %c0_i32_65] : memref<1000x128xf32, #tpu.memory_space<any>> -> memref<1x128xf32, #tpu.memory_space<any>>
      %99 = tpu.memref_squeeze %98 : memref<1x128xf32, #tpu.memory_space<any>> -> memref<128xf32, #tpu.memory_space<any>>
      %c0_i32_66 = arith.constant 0 : i32
      %100 = tpu.memref_slice %arg5[%84, %c1_i32_63, %c0_i32_66] : memref<2x8x128xf32, #tpu.memory_space<vmem>> -> memref<1x1x128xf32, #tpu.memory_space<vmem>>
      %101 = tpu.memref_squeeze %100 : memref<1x1x128xf32, #tpu.memory_space<vmem>> -> memref<128xf32, #tpu.memory_space<vmem>>
      %102 = tpu.memref_slice %arg6[%84, %c1_i32_64] : memref<2x8x!tpu.dma_semaphore, #tpu.memory_space<semaphore_mem>> -> memref<1x1x!tpu.dma_semaphore, #tpu.memory_space<semaphore_mem>>
      %103 = tpu.memref_squeeze %102 : memref<1x1x!tpu.dma_semaphore, #tpu.memory_space<semaphore_mem>> -> memref<!tpu.dma_semaphore, #tpu.memory_space<semaphore_mem>>
      tpu.enqueue_dma source(%99 : memref<128xf32, #tpu.memory_space<any>>) target(%101 : memref<128xf32, #tpu.memory_space<vmem>>) target_semaphore(%103 : memref<!tpu.dma_semaphore, #tpu.memory_space<semaphore_mem>>)
      %c2_i32_67 = arith.constant 2 : i32
      %104 = arith.addi %85, %c2_i32_67 : i32
      %105 = arith.index_cast %104 : i32 to index
      %106 = memref.load %arg1[%105] : memref<16xi32, #tpu.memory_space<smem>>
      %c2_i32_68 = arith.constant 2 : i32
      %c2_i32_69 = arith.constant 2 : i32
      %c0_i32_70 = arith.constant 0 : i32
      %107 = tpu.memref_slice %arg2[%106, %c0_i32_70] : memref<1000x128xf32, #tpu.memory_space<any>> -> memref<1x128xf32, #tpu.memory_space<any>>
      %108 = tpu.memref_squeeze %107 : memref<1x128xf32, #tpu.memory_space<any>> -> memref<128xf32, #tpu.memory_space<any>>
      %c0_i32_71 = arith.constant 0 : i32
      %109 = tpu.memref_slice %arg5[%84, %c2_i32_68, %c0_i32_71] : memref<2x8x128xf32, #tpu.memory_space<vmem>> -> memref<1x1x128xf32, #tpu.memory_space<vmem>>
      %110 = tpu.memref_squeeze %109 : memref<1x1x128xf32, #tpu.memory_space<vmem>> -> memref<128xf32, #tpu.memory_space<vmem>>
      %111 = tpu.memref_slice %arg6[%84, %c2_i32_69] : memref<2x8x!tpu.dma_semaphore, #tpu.memory_space<semaphore_mem>> -> memref<1x1x!tpu.dma_semaphore, #tpu.memory_space<semaphore_mem>>
      %112 = tpu.memref_squeeze %111 : memref<1x1x!tpu.dma_semaphore, #tpu.memory_space<semaphore_mem>> -> memref<!tpu.dma_semaphore, #tpu.memory_space<semaphore_mem>>
      tpu.enqueue_dma source(%108 : memref<128xf32, #tpu.memory_space<any>>) target(%110 : memref<128xf32, #tpu.memory_space<vmem>>) target_semaphore(%112 : memref<!tpu.dma_semaphore, #tpu.memory_space<semaphore_mem>>)
      %c3_i32_72 = arith.constant 3 : i32
      %113 = arith.addi %85, %c3_i32_72 : i32
      %114 = arith.index_cast %113 : i32 to index
      %115 = memref.load %arg1[%114] : memref<16xi32, #tpu.memory_space<smem>>
      %c3_i32_73 = arith.constant 3 : i32
      %c3_i32_74 = arith.constant 3 : i32
      %c0_i32_75 = arith.constant 0 : i32
      %116 = tpu.memref_slice %arg2[%115, %c0_i32_75] : memref<1000x128xf32, #tpu.memory_space<any>> -> memref<1x128xf32, #tpu.memory_space<any>>
      %117 = tpu.memref_squeeze %116 : memref<1x128xf32, #tpu.memory_space<any>> -> memref<128xf32, #tpu.memory_space<any>>
      %c0_i32_76 = arith.constant 0 : i32
      %118 = tpu.memref_slice %arg5[%84, %c3_i32_73, %c0_i32_76] : memref<2x8x128xf32, #tpu.memory_space<vmem>> -> memref<1x1x128xf32, #tpu.memory_space<vmem>>
      %119 = tpu.memref_squeeze %118 : memref<1x1x128xf32, #tpu.memory_space<vmem>> -> memref<128xf32, #tpu.memory_space<vmem>>
      %120 = tpu.memref_slice %arg6[%84, %c3_i32_74] : memref<2x8x!tpu.dma_semaphore, #tpu.memory_space<semaphore_mem>> -> memref<1x1x!tpu.dma_semaphore, #tpu.memory_space<semaphore_mem>>
      %121 = tpu.memref_squeeze %120 : memref<1x1x!tpu.dma_semaphore, #tpu.memory_space<semaphore_mem>> -> memref<!tpu.dma_semaphore, #tpu.memory_space<semaphore_mem>>
      tpu.enqueue_dma source(%117 : memref<128xf32, #tpu.memory_space<any>>) target(%119 : memref<128xf32, #tpu.memory_space<vmem>>) target_semaphore(%121 : memref<!tpu.dma_semaphore, #tpu.memory_space<semaphore_mem>>)
      %c4_i32_77 = arith.constant 4 : i32
      %122 = arith.addi %85, %c4_i32_77 : i32
      %123 = arith.index_cast %122 : i32 to index
      %124 = memref.load %arg1[%123] : memref<16xi32, #tpu.memory_space<smem>>
      %c4_i32_78 = arith.constant 4 : i32
      %c4_i32_79 = arith.constant 4 : i32
      %c0_i32_80 = arith.constant 0 : i32
      %125 = tpu.memref_slice %arg2[%124, %c0_i32_80] : memref<1000x128xf32, #tpu.memory_space<any>> -> memref<1x128xf32, #tpu.memory_space<any>>
      %126 = tpu.memref_squeeze %125 : memref<1x128xf32, #tpu.memory_space<any>> -> memref<128xf32, #tpu.memory_space<any>>
      %c0_i32_81 = arith.constant 0 : i32
      %127 = tpu.memref_slice %arg5[%84, %c4_i32_78, %c0_i32_81] : memref<2x8x128xf32, #tpu.memory_space<vmem>> -> memref<1x1x128xf32, #tpu.memory_space<vmem>>
      %128 = tpu.memref_squeeze %127 : memref<1x1x128xf32, #tpu.memory_space<vmem>> -> memref<128xf32, #tpu.memory_space<vmem>>
      %129 = tpu.memref_slice %arg6[%84, %c4_i32_79] : memref<2x8x!tpu.dma_semaphore, #tpu.memory_space<semaphore_mem>> -> memref<1x1x!tpu.dma_semaphore, #tpu.memory_space<semaphore_mem>>
      %130 = tpu.memref_squeeze %129 : memref<1x1x!tpu.dma_semaphore, #tpu.memory_space<semaphore_mem>> -> memref<!tpu.dma_semaphore, #tpu.memory_space<semaphore_mem>>
      tpu.enqueue_dma source(%126 : memref<128xf32, #tpu.memory_space<any>>) target(%128 : memref<128xf32, #tpu.memory_space<vmem>>) target_semaphore(%130 : memref<!tpu.dma_semaphore, #tpu.memory_space<semaphore_mem>>)
      %c5_i32_82 = arith.constant 5 : i32
      %131 = arith.addi %85, %c5_i32_82 : i32
      %132 = arith.index_cast %131 : i32 to index
      %133 = memref.load %arg1[%132] : memref<16xi32, #tpu.memory_space<smem>>
      %c5_i32_83 = arith.constant 5 : i32
      %c5_i32_84 = arith.constant 5 : i32
      %c0_i32_85 = arith.constant 0 : i32
      %134 = tpu.memref_slice %arg2[%133, %c0_i32_85] : memref<1000x128xf32, #tpu.memory_space<any>> -> memref<1x128xf32, #tpu.memory_space<any>>
      %135 = tpu.memref_squeeze %134 : memref<1x128xf32, #tpu.memory_space<any>> -> memref<128xf32, #tpu.memory_space<any>>
      %c0_i32_86 = arith.constant 0 : i32
      %136 = tpu.memref_slice %arg5[%84, %c5_i32_83, %c0_i32_86] : memref<2x8x128xf32, #tpu.memory_space<vmem>> -> memref<1x1x128xf32, #tpu.memory_space<vmem>>
      %137 = tpu.memref_squeeze %136 : memref<1x1x128xf32, #tpu.memory_space<vmem>> -> memref<128xf32, #tpu.memory_space<vmem>>
      %138 = tpu.memref_slice %arg6[%84, %c5_i32_84] : memref<2x8x!tpu.dma_semaphore, #tpu.memory_space<semaphore_mem>> -> memref<1x1x!tpu.dma_semaphore, #tpu.memory_space<semaphore_mem>>
      %139 = tpu.memref_squeeze %138 : memref<1x1x!tpu.dma_semaphore, #tpu.memory_space<semaphore_mem>> -> memref<!tpu.dma_semaphore, #tpu.memory_space<semaphore_mem>>
      tpu.enqueue_dma source(%135 : memref<128xf32, #tpu.memory_space<any>>) target(%137 : memref<128xf32, #tpu.memory_space<vmem>>) target_semaphore(%139 : memref<!tpu.dma_semaphore, #tpu.memory_space<semaphore_mem>>)
      %c6_i32_87 = arith.constant 6 : i32
      %140 = arith.addi %85, %c6_i32_87 : i32
      %141 = arith.index_cast %140 : i32 to index
      %142 = memref.load %arg1[%141] : memref<16xi32, #tpu.memory_space<smem>>
      %c6_i32_88 = arith.constant 6 : i32
      %c6_i32_89 = arith.constant 6 : i32
      %c0_i32_90 = arith.constant 0 : i32
      %143 = tpu.memref_slice %arg2[%142, %c0_i32_90] : memref<1000x128xf32, #tpu.memory_space<any>> -> memref<1x128xf32, #tpu.memory_space<any>>
      %144 = tpu.memref_squeeze %143 : memref<1x128xf32, #tpu.memory_space<any>> -> memref<128xf32, #tpu.memory_space<any>>
      %c0_i32_91 = arith.constant 0 : i32
      %145 = tpu.memref_slice %arg5[%84, %c6_i32_88, %c0_i32_91] : memref<2x8x128xf32, #tpu.memory_space<vmem>> -> memref<1x1x128xf32, #tpu.memory_space<vmem>>
      %146 = tpu.memref_squeeze %145 : memref<1x1x128xf32, #tpu.memory_space<vmem>> -> memref<128xf32, #tpu.memory_space<vmem>>
      %147 = tpu.memref_slice %arg6[%84, %c6_i32_89] : memref<2x8x!tpu.dma_semaphore, #tpu.memory_space<semaphore_mem>> -> memref<1x1x!tpu.dma_semaphore, #tpu.memory_space<semaphore_mem>>
      %148 = tpu.memref_squeeze %147 : memref<1x1x!tpu.dma_semaphore, #tpu.memory_space<semaphore_mem>> -> memref<!tpu.dma_semaphore, #tpu.memory_space<semaphore_mem>>
      tpu.enqueue_dma source(%144 : memref<128xf32, #tpu.memory_space<any>>) target(%146 : memref<128xf32, #tpu.memory_space<vmem>>) target_semaphore(%148 : memref<!tpu.dma_semaphore, #tpu.memory_space<semaphore_mem>>)
      %c7_i32_92 = arith.constant 7 : i32
      %149 = arith.addi %85, %c7_i32_92 : i32
      %150 = arith.index_cast %149 : i32 to index
      %151 = memref.load %arg1[%150] : memref<16xi32, #tpu.memory_space<smem>>
      %c7_i32_93 = arith.constant 7 : i32
      %c7_i32_94 = arith.constant 7 : i32
      %c0_i32_95 = arith.constant 0 : i32
      %152 = tpu.memref_slice %arg2[%151, %c0_i32_95] : memref<1000x128xf32, #tpu.memory_space<any>> -> memref<1x128xf32, #tpu.memory_space<any>>
      %153 = tpu.memref_squeeze %152 : memref<1x128xf32, #tpu.memory_space<any>> -> memref<128xf32, #tpu.memory_space<any>>
      %c0_i32_96 = arith.constant 0 : i32
      %154 = tpu.memref_slice %arg5[%84, %c7_i32_93, %c0_i32_96] : memref<2x8x128xf32, #tpu.memory_space<vmem>> -> memref<1x1x128xf32, #tpu.memory_space<vmem>>
      %155 = tpu.memref_squeeze %154 : memref<1x1x128xf32, #tpu.memory_space<vmem>> -> memref<128xf32, #tpu.memory_space<vmem>>
      %156 = tpu.memref_slice %arg6[%84, %c7_i32_94] : memref<2x8x!tpu.dma_semaphore, #tpu.memory_space<semaphore_mem>> -> memref<1x1x!tpu.dma_semaphore, #tpu.memory_space<semaphore_mem>>
      %157 = tpu.memref_squeeze %156 : memref<1x1x!tpu.dma_semaphore, #tpu.memory_space<semaphore_mem>> -> memref<!tpu.dma_semaphore, #tpu.memory_space<semaphore_mem>>
      tpu.enqueue_dma source(%153 : memref<128xf32, #tpu.memory_space<any>>) target(%155 : memref<128xf32, #tpu.memory_space<vmem>>) target_semaphore(%157 : memref<!tpu.dma_semaphore, #tpu.memory_space<semaphore_mem>>)
    } else {
    }
    %c2_i32_2 = arith.constant 2 : i32
    %c0_i32_3 = arith.constant 0 : i32
    %7 = arith.cmpi eq, %c2_i32_2, %c0_i32_3 : i32
    %c1_i32_4 = arith.constant 1 : i32
    %8 = arith.select %7, %c1_i32_4, %c2_i32_2 : i32
    %9 = arith.remsi %arg0, %8 : i32
    %c0_i32_5 = arith.constant 0 : i32
    %10 = arith.cmpi ne, %9, %c0_i32_5 : i32
    %c0_i32_6 = arith.constant 0 : i32
    %11 = arith.cmpi slt, %9, %c0_i32_6 : i32
    %c0_i32_7 = arith.constant 0 : i32
    %12 = arith.cmpi slt, %8, %c0_i32_7 : i32
    %13 = arith.xori %11, %12 : i1
    %14 = arith.andi %13, %10 : i1
    %15 = arith.addi %9, %8 : i32
    %16 = arith.select %14, %15, %9 : i32
    %c0_i32_8 = arith.constant 0 : i32
    %c0_i32_9 = arith.constant 0 : i32
    %c0_i32_10 = arith.constant 0 : i32
    %c0_i32_11 = arith.constant 0 : i32
    %17 = tpu.memref_slice %arg2[%c0_i32_8, %c0_i32_11] : memref<1000x128xf32, #tpu.memory_space<any>> -> memref<1x128xf32, #tpu.memory_space<any>>
    %18 = tpu.memref_squeeze %17 : memref<1x128xf32, #tpu.memory_space<any>> -> memref<128xf32, #tpu.memory_space<any>>
    %c0_i32_12 = arith.constant 0 : i32
    %19 = tpu.memref_slice %arg5[%16, %c0_i32_9, %c0_i32_12] : memref<2x8x128xf32, #tpu.memory_space<vmem>> -> memref<1x1x128xf32, #tpu.memory_space<vmem>>
    %20 = tpu.memref_squeeze %19 : memref<1x1x128xf32, #tpu.memory_space<vmem>> -> memref<128xf32, #tpu.memory_space<vmem>>
    %21 = tpu.memref_slice %arg6[%16, %c0_i32_10] : memref<2x8x!tpu.dma_semaphore, #tpu.memory_space<semaphore_mem>> -> memref<1x1x!tpu.dma_semaphore, #tpu.memory_space<semaphore_mem>>
    %22 = tpu.memref_squeeze %21 : memref<1x1x!tpu.dma_semaphore, #tpu.memory_space<semaphore_mem>> -> memref<!tpu.dma_semaphore, #tpu.memory_space<semaphore_mem>>
    tpu.wait_dma2 semaphore(%22 : memref<!tpu.dma_semaphore, #tpu.memory_space<semaphore_mem>>) src(%18 : memref<128xf32, #tpu.memory_space<any>>) dst(%20 : memref<128xf32, #tpu.memory_space<vmem>>)
    %c0_i32_13 = arith.constant 0 : i32
    %c1_i32_14 = arith.constant 1 : i32
    %c1_i32_15 = arith.constant 1 : i32
    %c0_i32_16 = arith.constant 0 : i32
    %23 = tpu.memref_slice %arg2[%c0_i32_13, %c0_i32_16] : memref<1000x128xf32, #tpu.memory_space<any>> -> memref<1x128xf32, #tpu.memory_space<any>>
    %24 = tpu.memref_squeeze %23 : memref<1x128xf32, #tpu.memory_space<any>> -> memref<128xf32, #tpu.memory_space<any>>
    %c0_i32_17 = arith.constant 0 : i32
    %25 = tpu.memref_slice %arg5[%16, %c1_i32_14, %c0_i32_17] : memref<2x8x128xf32, #tpu.memory_space<vmem>> -> memref<1x1x128xf32, #tpu.memory_space<vmem>>
    %26 = tpu.memref_squeeze %25 : memref<1x1x128xf32, #tpu.memory_space<vmem>> -> memref<128xf32, #tpu.memory_space<vmem>>
    %27 = tpu.memref_slice %arg6[%16, %c1_i32_15] : memref<2x8x!tpu.dma_semaphore, #tpu.memory_space<semaphore_mem>> -> memref<1x1x!tpu.dma_semaphore, #tpu.memory_space<semaphore_mem>>
    %28 = tpu.memref_squeeze %27 : memref<1x1x!tpu.dma_semaphore, #tpu.memory_space<semaphore_mem>> -> memref<!tpu.dma_semaphore, #tpu.memory_space<semaphore_mem>>
    tpu.wait_dma2 semaphore(%28 : memref<!tpu.dma_semaphore, #tpu.memory_space<semaphore_mem>>) src(%24 : memref<128xf32, #tpu.memory_space<any>>) dst(%26 : memref<128xf32, #tpu.memory_space<vmem>>)
    %c0_i32_18 = arith.constant 0 : i32
    %c2_i32_19 = arith.constant 2 : i32
    %c2_i32_20 = arith.constant 2 : i32
    %c0_i32_21 = arith.constant 0 : i32
    %29 = tpu.memref_slice %arg2[%c0_i32_18, %c0_i32_21] : memref<1000x128xf32, #tpu.memory_space<any>> -> memref<1x128xf32, #tpu.memory_space<any>>
    %30 = tpu.memref_squeeze %29 : memref<1x128xf32, #tpu.memory_space<any>> -> memref<128xf32, #tpu.memory_space<any>>
    %c0_i32_22 = arith.constant 0 : i32
    %31 = tpu.memref_slice %arg5[%16, %c2_i32_19, %c0_i32_22] : memref<2x8x128xf32, #tpu.memory_space<vmem>> -> memref<1x1x128xf32, #tpu.memory_space<vmem>>
    %32 = tpu.memref_squeeze %31 : memref<1x1x128xf32, #tpu.memory_space<vmem>> -> memref<128xf32, #tpu.memory_space<vmem>>
    %33 = tpu.memref_slice %arg6[%16, %c2_i32_20] : memref<2x8x!tpu.dma_semaphore, #tpu.memory_space<semaphore_mem>> -> memref<1x1x!tpu.dma_semaphore, #tpu.memory_space<semaphore_mem>>
    %34 = tpu.memref_squeeze %33 : memref<1x1x!tpu.dma_semaphore, #tpu.memory_space<semaphore_mem>> -> memref<!tpu.dma_semaphore, #tpu.memory_space<semaphore_mem>>
    tpu.wait_dma2 semaphore(%34 : memref<!tpu.dma_semaphore, #tpu.memory_space<semaphore_mem>>) src(%30 : memref<128xf32, #tpu.memory_space<any>>) dst(%32 : memref<128xf32, #tpu.memory_space<vmem>>)
    %c0_i32_23 = arith.constant 0 : i32
    %c3_i32 = arith.constant 3 : i32
    %c3_i32_24 = arith.constant 3 : i32
    %c0_i32_25 = arith.constant 0 : i32
    %35 = tpu.memref_slice %arg2[%c0_i32_23, %c0_i32_25] : memref<1000x128xf32, #tpu.memory_space<any>> -> memref<1x128xf32, #tpu.memory_space<any>>
    %36 = tpu.memref_squeeze %35 : memref<1x128xf32, #tpu.memory_space<any>> -> memref<128xf32, #tpu.memory_space<any>>
    %c0_i32_26 = arith.constant 0 : i32
    %37 = tpu.memref_slice %arg5[%16, %c3_i32, %c0_i32_26] : memref<2x8x128xf32, #tpu.memory_space<vmem>> -> memref<1x1x128xf32, #tpu.memory_space<vmem>>
    %38 = tpu.memref_squeeze %37 : memref<1x1x128xf32, #tpu.memory_space<vmem>> -> memref<128xf32, #tpu.memory_space<vmem>>
    %39 = tpu.memref_slice %arg6[%16, %c3_i32_24] : memref<2x8x!tpu.dma_semaphore, #tpu.memory_space<semaphore_mem>> -> memref<1x1x!tpu.dma_semaphore, #tpu.memory_space<semaphore_mem>>
    %40 = tpu.memref_squeeze %39 : memref<1x1x!tpu.dma_semaphore, #tpu.memory_space<semaphore_mem>> -> memref<!tpu.dma_semaphore, #tpu.memory_space<semaphore_mem>>
    tpu.wait_dma2 semaphore(%40 : memref<!tpu.dma_semaphore, #tpu.memory_space<semaphore_mem>>) src(%36 : memref<128xf32, #tpu.memory_space<any>>) dst(%38 : memref<128xf32, #tpu.memory_space<vmem>>)
    %c0_i32_27 = arith.constant 0 : i32
    %c4_i32 = arith.constant 4 : i32
    %c4_i32_28 = arith.constant 4 : i32
    %c0_i32_29 = arith.constant 0 : i32
    %41 = tpu.memref_slice %arg2[%c0_i32_27, %c0_i32_29] : memref<1000x128xf32, #tpu.memory_space<any>> -> memref<1x128xf32, #tpu.memory_space<any>>
    %42 = tpu.memref_squeeze %41 : memref<1x128xf32, #tpu.memory_space<any>> -> memref<128xf32, #tpu.memory_space<any>>
    %c0_i32_30 = arith.constant 0 : i32
    %43 = tpu.memref_slice %arg5[%16, %c4_i32, %c0_i32_30] : memref<2x8x128xf32, #tpu.memory_space<vmem>> -> memref<1x1x128xf32, #tpu.memory_space<vmem>>
    %44 = tpu.memref_squeeze %43 : memref<1x1x128xf32, #tpu.memory_space<vmem>> -> memref<128xf32, #tpu.memory_space<vmem>>
    %45 = tpu.memref_slice %arg6[%16, %c4_i32_28] : memref<2x8x!tpu.dma_semaphore, #tpu.memory_space<semaphore_mem>> -> memref<1x1x!tpu.dma_semaphore, #tpu.memory_space<semaphore_mem>>
    %46 = tpu.memref_squeeze %45 : memref<1x1x!tpu.dma_semaphore, #tpu.memory_space<semaphore_mem>> -> memref<!tpu.dma_semaphore, #tpu.memory_space<semaphore_mem>>
    tpu.wait_dma2 semaphore(%46 : memref<!tpu.dma_semaphore, #tpu.memory_space<semaphore_mem>>) src(%42 : memref<128xf32, #tpu.memory_space<any>>) dst(%44 : memref<128xf32, #tpu.memory_space<vmem>>)
    %c0_i32_31 = arith.constant 0 : i32
    %c5_i32 = arith.constant 5 : i32
    %c5_i32_32 = arith.constant 5 : i32
    %c0_i32_33 = arith.constant 0 : i32
    %47 = tpu.memref_slice %arg2[%c0_i32_31, %c0_i32_33] : memref<1000x128xf32, #tpu.memory_space<any>> -> memref<1x128xf32, #tpu.memory_space<any>>
    %48 = tpu.memref_squeeze %47 : memref<1x128xf32, #tpu.memory_space<any>> -> memref<128xf32, #tpu.memory_space<any>>
    %c0_i32_34 = arith.constant 0 : i32
    %49 = tpu.memref_slice %arg5[%16, %c5_i32, %c0_i32_34] : memref<2x8x128xf32, #tpu.memory_space<vmem>> -> memref<1x1x128xf32, #tpu.memory_space<vmem>>
    %50 = tpu.memref_squeeze %49 : memref<1x1x128xf32, #tpu.memory_space<vmem>> -> memref<128xf32, #tpu.memory_space<vmem>>
    %51 = tpu.memref_slice %arg6[%16, %c5_i32_32] : memref<2x8x!tpu.dma_semaphore, #tpu.memory_space<semaphore_mem>> -> memref<1x1x!tpu.dma_semaphore, #tpu.memory_space<semaphore_mem>>
    %52 = tpu.memref_squeeze %51 : memref<1x1x!tpu.dma_semaphore, #tpu.memory_space<semaphore_mem>> -> memref<!tpu.dma_semaphore, #tpu.memory_space<semaphore_mem>>
    tpu.wait_dma2 semaphore(%52 : memref<!tpu.dma_semaphore, #tpu.memory_space<semaphore_mem>>) src(%48 : memref<128xf32, #tpu.memory_space<any>>) dst(%50 : memref<128xf32, #tpu.memory_space<vmem>>)
    %c0_i32_35 = arith.constant 0 : i32
    %c6_i32 = arith.constant 6 : i32
    %c6_i32_36 = arith.constant 6 : i32
    %c0_i32_37 = arith.constant 0 : i32
    %53 = tpu.memref_slice %arg2[%c0_i32_35, %c0_i32_37] : memref<1000x128xf32, #tpu.memory_space<any>> -> memref<1x128xf32, #tpu.memory_space<any>>
    %54 = tpu.memref_squeeze %53 : memref<1x128xf32, #tpu.memory_space<any>> -> memref<128xf32, #tpu.memory_space<any>>
    %c0_i32_38 = arith.constant 0 : i32
    %55 = tpu.memref_slice %arg5[%16, %c6_i32, %c0_i32_38] : memref<2x8x128xf32, #tpu.memory_space<vmem>> -> memref<1x1x128xf32, #tpu.memory_space<vmem>>
    %56 = tpu.memref_squeeze %55 : memref<1x1x128xf32, #tpu.memory_space<vmem>> -> memref<128xf32, #tpu.memory_space<vmem>>
    %57 = tpu.memref_slice %arg6[%16, %c6_i32_36] : memref<2x8x!tpu.dma_semaphore, #tpu.memory_space<semaphore_mem>> -> memref<1x1x!tpu.dma_semaphore, #tpu.memory_space<semaphore_mem>>
    %58 = tpu.memref_squeeze %57 : memref<1x1x!tpu.dma_semaphore, #tpu.memory_space<semaphore_mem>> -> memref<!tpu.dma_semaphore, #tpu.memory_space<semaphore_mem>>
    tpu.wait_dma2 semaphore(%58 : memref<!tpu.dma_semaphore, #tpu.memory_space<semaphore_mem>>) src(%54 : memref<128xf32, #tpu.memory_space<any>>) dst(%56 : memref<128xf32, #tpu.memory_space<vmem>>)
    %c0_i32_39 = arith.constant 0 : i32
    %c7_i32 = arith.constant 7 : i32
    %c7_i32_40 = arith.constant 7 : i32
    %c0_i32_41 = arith.constant 0 : i32
    %59 = tpu.memref_slice %arg2[%c0_i32_39, %c0_i32_41] : memref<1000x128xf32, #tpu.memory_space<any>> -> memref<1x128xf32, #tpu.memory_space<any>>
    %60 = tpu.memref_squeeze %59 : memref<1x128xf32, #tpu.memory_space<any>> -> memref<128xf32, #tpu.memory_space<any>>
    %c0_i32_42 = arith.constant 0 : i32
    %61 = tpu.memref_slice %arg5[%16, %c7_i32, %c0_i32_42] : memref<2x8x128xf32, #tpu.memory_space<vmem>> -> memref<1x1x128xf32, #tpu.memory_space<vmem>>
    %62 = tpu.memref_squeeze %61 : memref<1x1x128xf32, #tpu.memory_space<vmem>> -> memref<128xf32, #tpu.memory_space<vmem>>
    %63 = tpu.memref_slice %arg6[%16, %c7_i32_40] : memref<2x8x!tpu.dma_semaphore, #tpu.memory_space<semaphore_mem>> -> memref<1x1x!tpu.dma_semaphore, #tpu.memory_space<semaphore_mem>>
    %64 = tpu.memref_squeeze %63 : memref<1x1x!tpu.dma_semaphore, #tpu.memory_space<semaphore_mem>> -> memref<!tpu.dma_semaphore, #tpu.memory_space<semaphore_mem>>
    tpu.wait_dma2 semaphore(%64 : memref<!tpu.dma_semaphore, #tpu.memory_space<semaphore_mem>>) src(%60 : memref<128xf32, #tpu.memory_space<any>>) dst(%62 : memref<128xf32, #tpu.memory_space<vmem>>)
    %65 = arith.index_cast %16 : i32 to index
    %c0 = arith.constant 0 : index
    %c0_43 = arith.constant 0 : index
    %66 = vector.load %arg5[%65, %c0, %c0_43] : memref<2x8x128xf32, #tpu.memory_space<vmem>>, vector<1x8x128xf32>
    %67 = vector.shape_cast %66 : vector<1x8x128xf32> to vector<8x128xf32>
    %c0_44 = arith.constant 0 : index
    %c0_45 = arith.constant 0 : index
    %68 = vector.load %arg3[%c0_44, %c0_45] : memref<8x128xf32, #tpu.memory_space<vmem>>, vector<8x128xf32>
    %69 = arith.addf %67, %68 : vector<8x128xf32>
    %c0_46 = arith.constant 0 : index
    %c0_47 = arith.constant 0 : index
    %c0_48 = arith.constant 0 : index
    %70 = vector.load %arg4[%c0_46, %c0_47, %c0_48] : memref<1x8x128xf32, #tpu.memory_space<vmem>>, vector<1x8x128xf32>
    %71 = vector.shape_cast %70 : vector<1x8x128xf32> to vector<8x128xf32>
    %72 = vector.shape_cast %69 : vector<8x128xf32> to vector<1x8x128xf32>
    tpu.vector_store %arg4[%c0_46, %c0_47, %c0_48], %72 {strides = array<i32>} : memref<1x8x128xf32, #tpu.memory_space<vmem>>, vector<1x8x128xf32>,
    return
  }
  func.func @transform_1(%arg0: i32, %arg1: memref<16xi32, #tpu.memory_space<smem>>) -> (i32, i32) {
    %c0_i32 = arith.constant 0 : i32
    %c0_i32_0 = arith.constant 0 : i32
    %c0_i32_1 = arith.constant 0 : i32
    return %c0_i32, %c0_i32_0 : i32, i32
  }
  func.func @transform_2(%arg0: i32, %arg1: memref<16xi32, #tpu.memory_space<smem>>) -> (i32, i32, i32) {
    %c0_i32 = arith.constant 0 : i32
    %c0_i32_0 = arith.constant 0 : i32
    %c0_i32_1 = arith.constant 0 : i32
    return %arg0, %c0_i32, %c0_i32_0 : i32, i32, i32
  }
}

</mosaic_0001>

<bundles_post_ra>
// kernel: tpu_custom_call.1
= control target key start
LH: loop header
LB: loop body
LE: loop exit
PB: predicated region body
PF: predicated region fallthrough
CT: control target
= control target key end

     0   :  { %s1471_s12 = smov [#allocation5]   ;;  %s2091_s0 = inlined_call_operand.hbm [shape: s32[16], index: 0, kind: input, shape index: {}]   ;;  %s2092_s1 = inlined_call_operand.hbm [shape: f32[1000,128], index: 1, kind: input, shape index: {}]   ;;  %s2093_s2 = inlined_call_operand.hbm [shape: f32[8,128], index: 2, kind: input, shape index: {}]   ;;  %s2094_s3 = inlined_call_operand.hbm [shape: f32[2,8,128], index: 3, kind: output, shape index: {}]  }
   0x1   :  { %2102 = sst [smem:[#allocation76_spill]] %s2093_s2 }
   0x2   :  { %9 = dma.hbm_to_smem %s2091_s0, 16, %s1471_s12, [#allocation4] }
   0x3   :  { %1429 = dma.done.wait [#allocation4], 16 }
   0x4   :  { %1430 = vsyncadd [#allocation4], 4294967280 }
   0x5   :  { %11 = sfence }
   0x6   :  { %12 = vsyncpa [#allocation7], 0 }
   0x7   :  { %13 = vsyncpa [#allocation8], 0 }
   0x8   :  { %15 = vsyncpa [#allocation8 + $0x1], 0  ;;  %s1505_s15 = smov 0   ;;  %s1507_s16 = smov 0  }
   0x9   :  { %s1509_s17 = smov 0   ;;  %s1511_s18 = smov 0  }
   0xa LB: > { %2103 = sst [smem:[#allocation71_spill]] %s1457_s15  ;;  %s1526_s0 = sadd.s32 4294967295, %s1469_s18   ;;  %s1469_s18 = sphi %s1511_s18, %s2160_s18   ;;  %s1465_s17 = sphi %s1509_s17, %s2162_s17   ;;  %s1461_s16 = sphi %s1507_s16, %s2164_s16   ;;  %s1457_s15 = sphi %s1505_s15, %s2163_s15  }
   0xb   : > { %2104 = sst [smem:[#allocation72_spill]] %s1465_s17  ;;  %s749_s19 = sadd.s32 4294967294, %s1469_s18  }
   0xc   : > { %s1530_s20 = sadd.s32 1, %s1469_s18   ;;  %s49_s21 = sadd.s32 1, %s1465_s17 }
   0xd   : > { %2105 = sst [smem:[#allocation73_spill]] %s1530_s20  ;;  %s46_s22 = ssub.s32 %s1469_s18, %s1530_s20 }
   0xe   : > { %p59_p0 = scmp.ne.s32.totalorder %s1465_s17, %s1461_s16  ;;  %p47_p1 = scmp.eq.s32.totalorder %s46_s22, 0 }
   0xf   : > { %p60_p2 = scmp.eq.s32.totalorder %s1526_s0, 1  ;;  %p65_p3 = scmp.ne.s32.totalorder %s1461_s16, %s1457_s15 }
  0x10   : > { %p66_p4 = scmp.eq.s32.totalorder %s749_s19, 1  ;;  %p750_p7 = scmp.ge.s32.totalorder %s1469_s18, 1 }
  0x11   : > { %s1541_s23 = scalar_select %p47_p1, %s1465_s17, %s49_s21  }
  0x12   : > { %p1543_p5 = por %p60_p2, %p59_p0  ;;  %p1547_p6 = por %p66_p4, %p65_p3 }
  0x13   : > { %2106 = sst [smem:[#allocation74_spill]] %s1541_s23  ;;  %p73_p8 = scmp.lt.s32.totalorder %s1469_s18, 3 }
  0x14   : > { %s2107_s24 = scalar_select %p1543_p5, 1, 0 }
  0x15   : > { %s2108_s25 = scalar_select %p1547_p6, 1, 0 }
  0x16   : > { %p890_p9 = scmp.eq.s32.totalorder %s1526_s0, 0  ;;  %p1554_p10 = pnand %p750_p7, %p73_p8 }
  0x17   : > { %2109 = sst [smem:[#allocation75_spill]] %s2108_s25  ;;  %s1472_s27 = smov [#allocation6]  }
  0x18   : > { %s86_s28 = sshll.u32 %s1472_s27, 4  ;;  %p882_p11 = pneg %p1554_p10  ;;  %s87_s28 = int_to_ptr.vmem [resolvable:$true] %s86_s28 }
  0x19   : > { %s956_s29 = scalar_lea.vmem %s87_s28, 128  ;;  %p964_p3 = scmp.lt.s32.totalorder %s87_s28, %s87_s28 }
  0x1a   : > { %p883_p12 = pnand %p890_p9, %p882_p11  ;;  %p957_p0 = scmp.ne.s32.totalorder %s87_s28, %s956_s29 }
  0x1b   : > { %p965_p4 = scmp.lt.s32.totalorder %s956_s29, %s956_s29 }
  0x1c   : > { %p947_p13 = pneg %p883_p12 }
  0x1d   : > { %p966_p6 = por %p965_p4, %p964_p3 }
  0x1e   : > { %p959_p1 = pnand %p957_p0, %p947_p13 }
  0x20   : > { %p960_p2 = pneg %p959_p1 }
  0x22   : > { %p967_p7 = pnand %p966_p6, %p960_p2 }
  0x24   : > { %970 = shalt.err (!%p967_p7)
}
  0x25   : > { %s2111_s2 = sld [smem:[#allocation76_spill]] }
  0x27   : > { %99 = sbr.rel (%p1554_p10) target bundleno = 536 (0x218), region = 24 }
  0x2b   : > { %885 = dma.hbm_to_vmem [thread:$0]  (!%p883_p12), %s2111_s2, 128, %s87_s28, [#allocation7]  }
  0x2c   : > { %1432 = dma.done.wait (%p890_p9), [#allocation7], 128  }
  0x2d   : > { %1434 = vsyncadd (%p890_p9), [#allocation7], 4294967168  ;;  %s2095_s5 = sand.u32 1, %s1461_s16   ;;  %s1573_s6 = sshll.u32 %s1526_s0, 3 }
  0x2e   : > { %s1577_s7 = sshll.u32 %s2095_s5, 3  ;;  %s1473_s8 = smov [#allocation2]  }
  0x2f   : > { %s129_s9 = sshll.u32 %s1473_s8, 4  ;;  %s133_s12 = sadd.s32 1, %s1573_s6  ;;  %s1584_s9 = int_to_ptr.vmem [resolvable:$true] %s129_s9 }
  0x30   : > { %s831_s10 = scalar_select %p890_p9, [#allocation5], [#allocation44] }
  0x31   : > { %s832_s11 = scalar_select %p890_p9, %s1573_s6, 0 }
  0x32   : > { %s834_s14 = scalar_select %p890_p9, [#allocation5], [#allocation45] }
  0x33   : > { %s119_s13 = sld [smem:[%s831_s10 + %s832_s11]]  ;;  %s2166_s12 = smov (!%p890_p9, %s133_s12), 0 }
  0x34   : > { %s1474_s19 = smov [#allocation2 + $0x1]   ;;  %s1592_s26 = sld [smem:[%s834_s14 + %s2166_s12]] }
  0x35   : > { %s146_s21 = sshll.u32 %s1474_s19, 4  ;;  %s1475_s8 = smov [#allocation2 + $0x2]   ;;  %s1594_s21 = int_to_ptr.vmem [resolvable:$true] %s146_s21 }
  0x36   : > { %s1598_s27 = scalar_select %p890_p9, [#allocation5], [#allocation46] }
  0x37   : > { %s163_s10 = sshll.u32 %s1475_s8, 4  ;;  %s1608_s14 = scalar_lea.hbm %s2092_s1, 16000  ;;  %s1632_s10 = int_to_ptr.vmem [resolvable:$true] %s163_s10 }
  0x39   : > { %s757_s28 = sshll.u32 %s119_s13, 4 }
  0x3a   : > { %s121_s4 = scalar_lea.hbm %s2092_s1, %s757_s28 }
  0x3b   : > { %s971_s11 = scalar_lea.hbm %s121_s4, 16  ;;  %p976_p11 = scmp.lt.s32.totalorder %s121_s4, %s2092_s1 }
  0x3c   : > { %p972_p6 = scmp.ne.s32.totalorder %s121_s4, %s971_s11  ;;  %p977_p12 = scmp.lt.s32.totalorder %s1608_s14, %s971_s11 }
  0x3e   : > { %p973_p8 = pnand %p972_p6, %p890_p9  ;;  %p978_p13 = por %p977_p12, %p976_p11 }
  0x40   : > { %p974_p10 = pneg %p973_p8 }
  0x42   : > { %p979_p0 = pnand %p978_p13, %p974_p10 }
  0x44   : > { %982 = shalt.err (!%p979_p0)  }
  0x45   : > { %s983_s13 = scalar_lea.vmem %s1584_s9, 16  ;;  %s1619_s28 = scalar_lea.vmem %s1584_s9, 256 }
  0x46   : > { %p984_p1 = scmp.ne.s32.totalorder %s1584_s9, %s983_s13  ;;  %p990_p4 = scmp.lt.s32.totalorder %s1584_s9, %s1584_s9 }
  0x47   : > { %p991_p7 = scmp.lt.s32.totalorder %s1619_s28, %s983_s13 }
  0x48   : > { %p985_p2 = pnand %p984_p1, %p890_p9 }
  0x49   : > { %p992_p6 = por %p991_p7, %p990_p4 }
  0x4a   : > { %p986_p3 = pneg %p985_p2 }
  0x4c   : > { %p993_p8 = pnand %p992_p6, %p986_p3 }
  0x4e   : > { %996 = shalt.err (!%p993_p8)  }
  0x4f   : > { %833 = dma.hbm_to_vmem [thread:$0]  (%p890_p9), %s121_s4, 16, %s1584_s9, [#allocation3] }
  0x50   : > { %s2112_s5 = sadd.s32 2, %s1573_s6  ;;  %s758_s22 = sshll.u32 %s1592_s26, 4 }
  0x51   : > { %s2168_s5 = smov (!%p890_p9, %s2112_s5), 0  ;;  %s136_s8 = scalar_lea.hbm %s2092_s1, %s758_s22 }
  0x52   : > { %s1638_s11 = sld [smem:[%s1598_s27 + %s2168_s5]]  ;;  %s997_s19 = scalar_lea.hbm %s136_s8, 16 }
  0x53   : > { %p998_p10 = scmp.ne.s32.totalorder %s136_s8, %s997_s19  ;;  %p1002_p13 = scmp.lt.s32.totalorder %s136_s8, %s2092_s1 }
  0x54   : > { %p1003_p0 = scmp.lt.s32.totalorder %s1608_s14, %s997_s19 }
  0x55   : > { %p999_p11 = pnand %p998_p10, %p890_p9 }
  0x56   : > { %p1004_p1 = por %p1003_p0, %p1002_p13 }
  0x57   : > { %p1000_p12 = pneg %p999_p11 }
  0x59   : > { %p1005_p2 = pnand %p1004_p1, %p1000_p12 }
  0x5b   : > { %1008 = shalt.err (!%p1005_p2)  }
  0x5c   : > { %s1009_s26 = scalar_lea.vmem %s1594_s21, 16  ;;  %p1016_p6 = scmp.lt.s32.totalorder %s1594_s21, %s1584_s9 }
  0x5d   : > { %p1010_p3 = scmp.ne.s32.totalorder %s1594_s21, %s1009_s26  ;;  %p1017_p8 = scmp.lt.s32.totalorder %s1619_s28, %s1009_s26 }
  0x5f   : > { %p1011_p4 = pnand %p1010_p3, %p890_p9  ;;  %p1018_p10 = por %p1017_p8, %p1016_p6 }
  0x61   : > { %p1012_p7 = pneg %p1011_p4 }
  0x63   : > { %p1019_p11 = pnand %p1018_p10, %p1012_p7 }
  0x65   : > { %1022 = shalt.err (!%p1019_p11)  }
  0x66   : > { %836 = dma.hbm_to_vmem [thread:$0]  (%p890_p9), %s136_s8, 16, %s1594_s21, [#allocation3 + $0x1] }
  0x67   : > { %s167_s27 = sadd.s32 3, %s1573_s6  ;;  %s1476_s5 = smov [#allocation2 + $0x3]  }
  0x68   : > { %s840_s4 = scalar_select %p890_p9, [#allocation5], [#allocation47] }
  0x69   : > { %s2170_s27 = smov (!%p890_p9, %s167_s27), 0  ;;  %s180_s22 = sshll.u32 %s1476_s5, 4  ;;  %s1666_s22 = int_to_ptr.vmem [resolvable:$true] %s180_s22 }
  0x6a   : > { %s184_s29 = sadd.s32 4, %s1573_s6  ;;  %s759_s30 = sshll.u32 %s1638_s11, 4 }
  0x6b   : > { %s168_s19 = sld [smem:[%s840_s4 + %s2170_s27]]  ;;  %s153_s26 = scalar_lea.hbm %s2092_s1, %s759_s30 }
  0x6c   : > { %s1023_s2 = scalar_lea.hbm %s153_s26, 16  ;;  %p1028_p1 = scmp.lt.s32.totalorder %s153_s26, %s2092_s1 }
  0x6d   : > { %p1024_p12 = scmp.ne.s32.totalorder %s153_s26, %s1023_s2  ;;  %p1029_p2 = scmp.lt.s32.totalorder %s1608_s14, %s1023_s2 }
  0x6f   : > { %p1025_p13 = pnand %p1024_p12, %p890_p9  ;;  %p1030_p3 = por %p1029_p2, %p1028_p1 }
  0x71   : > { %p1026_p0 = pneg %p1025_p13 }
  0x73   : > { %p1031_p4 = pnand %p1030_p3, %p1026_p0 }
  0x75   : > { %1034 = shalt.err (!%p1031_p4)  }
  0x76   : > { %s1035_s11 = scalar_lea.vmem %s1632_s10, 16  ;;  %p1042_p10 = scmp.lt.s32.totalorder %s1632_s10, %s1584_s9 }
  0x77   : > { %p1036_p7 = scmp.ne.s32.totalorder %s1632_s10, %s1035_s11  ;;  %p1043_p11 = scmp.lt.s32.totalorder %s1619_s28, %s1035_s11 }
  0x79   : > { %p1037_p6 = pnand %p1036_p7, %p890_p9  ;;  %p1044_p12 = por %p1043_p11, %p1042_p10 }
  0x7b   : > { %p1038_p8 = pneg %p1037_p6 }
  0x7d   : > { %p1045_p13 = pnand %p1044_p12, %p1038_p8 }
  0x7f   : > { %1048 = shalt.err (!%p1045_p13)  }
  0x80   : > { %839 = dma.hbm_to_vmem [thread:$0]  (%p890_p9), %s153_s26, 16, %s1632_s10, [#allocation3 + $0x2] }
  0x81   : > { %s843_s2 = scalar_select %p890_p9, [#allocation5], [#allocation48] }
  0x82   : > { %s2172_s29 = smov (!%p890_p9, %s184_s29), 0  ;;  %s201_s27 = sadd.s32 5, %s1573_s6 }
  0x83   : > { %s760_s4 = sshll.u32 %s168_s19, 4  ;;  %s1689_s5 = sld [smem:[%s843_s2 + %s2172_s29]] }
  0x84   : > { %s170_s13 = scalar_lea.hbm %s2092_s1, %s760_s4  ;;  %s1477_s21 = smov [#allocation2 + $0x4]  }
  0x85   : > { %s197_s8 = sshll.u32 %s1477_s21, 4  ;;  %s1049_s11 = scalar_lea.hbm %s170_s13, 16  ;;  %s198_s8 = int_to_ptr.vmem [resolvable:$true] %s197_s8 }
  0x86   : > { %p1050_p0 = scmp.ne.s32.totalorder %s170_s13, %s1049_s11  ;;  %p1054_p3 = scmp.lt.s32.totalorder %s170_s13, %s2092_s1 }
  0x87   : > { %p1055_p4 = scmp.lt.s32.totalorder %s1608_s14, %s1049_s11 }
  0x88   : > { %p1051_p1 = pnand %p1050_p0, %p890_p9 }
  0x89   : > { %p1056_p7 = por %p1055_p4, %p1054_p3 }
  0x8a   : > { %p1052_p2 = pneg %p1051_p1 }
  0x8c   : > { %p1057_p6 = pnand %p1056_p7, %p1052_p2 }
  0x8e   : > { %1060 = shalt.err (!%p1057_p6)  }
  0x8f   : > { %s1061_s29 = scalar_lea.vmem %s1666_s22, 16  ;;  %p1068_p12 = scmp.lt.s32.totalorder %s1666_s22, %s1584_s9 }
  0x90   : > { %p1062_p8 = scmp.ne.s32.totalorder %s1666_s22, %s1061_s29  ;;  %p1069_p13 = scmp.lt.s32.totalorder %s1619_s28, %s1061_s29 }
  0x92   : > { %p1063_p10 = pnand %p1062_p8, %p890_p9  ;;  %p1070_p0 = por %p1069_p13, %p1068_p12 }
  0x94   : > { %p1064_p11 = pneg %p1063_p10 }
  0x96   : > { %p1071_p1 = pnand %p1070_p0, %p1064_p11 }
  0x98   : > { %1074 = shalt.err (!%p1071_p1)  }
  0x99   : > { %842 = dma.hbm_to_vmem [thread:$0]  (%p890_p9), %s170_s13, 16, %s1666_s22, [#allocation3 + $0x3] }
  0x9a   : > { %s846_s19 = scalar_select %p890_p9, [#allocation5], [#allocation49] }
  0x9b   : > { %s2174_s27 = smov (!%p890_p9, %s201_s27), 0  ;;  %s761_s2 = sshll.u32 %s1689_s5, 4 }
  0x9c   : > { %s1478_s4 = smov [#allocation2 + $0x5]   ;;  %s187_s11 = scalar_lea.hbm %s2092_s1, %s761_s2 }
  0x9d   : > { %s214_s30 = sshll.u32 %s1478_s4, 4  ;;  %s202_s10 = sld [smem:[%s846_s19 + %s2174_s27]]  ;;  %s215_s30 = int_to_ptr.vmem [resolvable:$true] %s214_s30 }
  0x9e   : > { %s1075_s26 = scalar_lea.hbm %s187_s11, 16  ;;  %p1080_p7 = scmp.lt.s32.totalorder %s187_s11, %s2092_s1 }
  0x9f   : > { %p1076_p2 = scmp.ne.s32.totalorder %s187_s11, %s1075_s26  ;;  %p1081_p6 = scmp.lt.s32.totalorder %s1608_s14, %s1075_s26 }
  0xa1   : > { %p1077_p3 = pnand %p1076_p2, %p890_p9  ;;  %p1082_p8 = por %p1081_p6, %p1080_p7 }
  0xa3   : > { %p1078_p4 = pneg %p1077_p3 }
  0xa5   : > { %p1083_p10 = pnand %p1082_p8, %p1078_p4 }
  0xa7   : > { %1086 = shalt.err (!%p1083_p10)  }
  0xa8   : > { %s1087_s5 = scalar_lea.vmem %s198_s8, 16  ;;  %p1094_p0 = scmp.lt.s32.totalorder %s198_s8, %s1584_s9 }
  0xa9   : > { %p1088_p11 = scmp.ne.s32.totalorder %s198_s8, %s1087_s5  ;;  %p1095_p1 = scmp.lt.s32.totalorder %s1619_s28, %s1087_s5 }
  0xab   : > { %p1089_p12 = pnand %p1088_p11, %p890_p9  ;;  %p1096_p2 = por %p1095_p1, %p1094_p0 }
  0xad   : > { %p1090_p13 = pneg %p1089_p12 }
  0xaf   : > { %p1097_p3 = pnand %p1096_p2, %p1090_p13 }
  0xb1   : > { %1100 = shalt.err (!%p1097_p3)  }
  0xb2   : > { %845 = dma.hbm_to_vmem [thread:$0]  (%p890_p9), %s187_s11, 16, %s198_s8, [#allocation3 + $0x4] }
  0xb3   : > { %s218_s27 = sadd.s32 6, %s1573_s6  ;;  %s235_s19 = sadd.s32 7, %s1573_s6 }
  0xb4   : > { %s849_s13 = scalar_select %p890_p9, [#allocation5], [#allocation50] }
  0xb5   : > { %s2176_s27 = smov (!%p890_p9, %s218_s27), 0  ;;  %s762_s2 = sshll.u32 %s202_s10, 4 }
  0xb6   : > { %s1736_s4 = sld [smem:[%s849_s13 + %s2176_s27]]  ;;  %s204_s26 = scalar_lea.hbm %s2092_s1, %s762_s2 }
  0xb7   : > { %s1479_s29 = smov [#allocation2 + $0x6]   ;;  %s1101_s5 = scalar_lea.hbm %s204_s26, 16 }
  0xb8   : > { %s231_s22 = sshll.u32 %s1479_s29, 4  ;;  %p1102_p4 = scmp.ne.s32.totalorder %s204_s26, %s1101_s5  ;;  %s232_s22 = int_to_ptr.vmem [resolvable:$true] %s231_s22 }
  0xb9   : > { %p1106_p8 = scmp.lt.s32.totalorder %s204_s26, %s2092_s1  ;;  %p1107_p10 = scmp.lt.s32.totalorder %s1608_s14, %s1101_s5 }
  0xba   : > { %p1103_p7 = pnand %p1102_p4, %p890_p9 }
  0xbb   : > { %p1108_p11 = por %p1107_p10, %p1106_p8 }
  0xbc   : > { %p1104_p6 = pneg %p1103_p7 }
  0xbe   : > { %p1109_p12 = pnand %p1108_p11, %p1104_p6 }
  0xc0   : > { %1112 = shalt.err (!%p1109_p12)  }
  0xc1   : > { %s1113_s10 = scalar_lea.vmem %s215_s30, 16  ;;  %p1120_p2 = scmp.lt.s32.totalorder %s215_s30, %s1584_s9 }
  0xc2   : > { %p1114_p13 = scmp.ne.s32.totalorder %s215_s30, %s1113_s10  ;;  %p1121_p3 = scmp.lt.s32.totalorder %s1619_s28, %s1113_s10 }
  0xc4   : > { %p1115_p0 = pnand %p1114_p13, %p890_p9  ;;  %p1122_p4 = por %p1121_p3, %p1120_p2 }
  0xc6   : > { %p1116_p1 = pneg %p1115_p0 }
  0xc8   : > { %p1123_p7 = pnand %p1122_p4, %p1116_p1 }
  0xca   : > { %1126 = shalt.err (!%p1123_p7)  }
  0xcb   : > { %848 = dma.hbm_to_vmem [thread:$0]  (%p890_p9), %s204_s26, 16, %s215_s30, [#allocation3 + $0x5] }
  0xcc   : > { %s852_s27 = scalar_select %p890_p9, [#allocation5], [#allocation51] }
  0xcd   : > { %s2178_s19 = smov (!%p890_p9, %s235_s19), 0  ;;  %s763_s13 = sshll.u32 %s1736_s4, 4 }
  0xce   : > { %s1480_s2 = smov [#allocation2 + $0x7]   ;;  %s221_s5 = scalar_lea.hbm %s2092_s1, %s763_s13 }
  0xcf   : > { %s248_s12 = sshll.u32 %s1480_s2, 4  ;;  %s1761_s8 = sld [smem:[%s852_s27 + %s2178_s19]]  ;;  %s1775_s12 = int_to_ptr.vmem [resolvable:$true] %s248_s12 }
  0xd0   : > { %s1127_s11 = scalar_lea.hbm %s221_s5, 16  ;;  %p1132_p11 = scmp.lt.s32.totalorder %s221_s5, %s2092_s1 }
  0xd1   : > { %p1128_p6 = scmp.ne.s32.totalorder %s221_s5, %s1127_s11  ;;  %p1133_p12 = scmp.lt.s32.totalorder %s1608_s14, %s1127_s11 }
  0xd3   : > { %p1129_p8 = pnand %p1128_p6, %p890_p9  ;;  %p1134_p13 = por %p1133_p12, %p1132_p11 }
  0xd5   : > { %p1130_p10 = pneg %p1129_p8 }
  0xd7   : > { %p1135_p0 = pnand %p1134_p13, %p1130_p10 }
  0xd9   : > { %1138 = shalt.err (!%p1135_p0)  }
  0xda   : > { %s1139_s4 = scalar_lea.vmem %s232_s22, 16  ;;  %p1146_p4 = scmp.lt.s32.totalorder %s232_s22, %s1584_s9 }
  0xdb   : > { %p1140_p1 = scmp.ne.s32.totalorder %s232_s22, %s1139_s4  ;;  %p1147_p7 = scmp.lt.s32.totalorder %s1619_s28, %s1139_s4 }
  0xdd   : > { %p1141_p2 = pnand %p1140_p1, %p890_p9  ;;  %p1148_p6 = por %p1147_p7, %p1146_p4 }
  0xdf   : > { %p1142_p3 = pneg %p1141_p2 }
  0xe1   : > { %p1149_p8 = pnand %p1148_p6, %p1142_p3 }
  0xe3   : > { %1152 = shalt.err (!%p1149_p8)  }
  0xe4   : > { %851 = dma.hbm_to_vmem [thread:$0]  (%p890_p9), %s221_s5, 16, %s232_s22, [#allocation3 + $0x6] }
  0xe5   : > { %s1778_s19 = sadd.s32 1, %s1526_s0  ;;  %s1785_s13 = sadd.s32 8, %s1573_s6 }
  0xe6   : > { %s258_s10 = ssub.s32 0, %s1778_s19  ;;  %s764_s2 = sshll.u32 %s1761_s8, 4 }
  0xe7   : > { %s766_s27 = smin.u32 %s258_s10, %s1778_s19  ;;  %s238_s22 = scalar_lea.hbm %s2092_s1, %s764_s2 }
  0xe8   : > { %s260_s21 = sand.u32 1, %s766_s27   ;;  %s1153_s30 = scalar_lea.hbm %s238_s22, 16 }
  0xe9   : > { %s261_s5 = ssub.s32 0, %s260_s21  ;;  %p1154_p12 = scmp.ne.s32.totalorder %s238_s22, %s1153_s30 }
  0xea   : > { %p1158_p1 = scmp.lt.s32.totalorder %s238_s22, %s2092_s1  ;;  %p1159_p2 = scmp.lt.s32.totalorder %s1608_s14, %s1153_s30 }
  0xeb   : > { %p1155_p13 = pnand %p1154_p12, %p890_p9 }
  0xec   : > { %p1160_p3 = por %p1159_p2, %p1158_p1 }
  0xed   : > { %p1156_p0 = pneg %p1155_p13 }
  0xef   : > { %p1161_p4 = pnand %p1160_p3, %p1156_p0 }
  0xf1   : > { %1164 = shalt.err (!%p1161_p4)  }
  0xf2   : > { %s1165_s6 = scalar_lea.vmem %s1775_s12, 16  ;;  %p1172_p12 = scmp.lt.s32.totalorder %s1775_s12, %s1584_s9 }
  0xf3   : > { %p1166_p7 = scmp.ne.s32.totalorder %s1775_s12, %s1165_s6  ;;  %p1173_p13 = scmp.lt.s32.totalorder %s1619_s28, %s1165_s6 }
  0xf5   : > { %p1167_p6 = pnand %p1166_p7, %p890_p9  ;;  %p1174_p10 = por %p1173_p13, %p1172_p12 }
  0xf7   : > { %p1168_p8 = pneg %p1167_p6 }
  0xf9   : > { %p1175_p11 = pnand %p1174_p10, %p1168_p8 }
  0xfb   : > { %1178 = shalt.err (!%p1175_p11)  }
  0xfc   : > { %854 = dma.hbm_to_vmem [thread:$0]  (%p890_p9), %s238_s22, 16, %s1775_s12, [#allocation3 + $0x7] }
  0xfd   : > { %p2113_p0 = scmp.lt.s32.totalorder %s1778_s19, 0  ;;  %p2114_p1 = scmp.lt.s32.totalorder %s1778_s19, 2 }
  0xfe   : > { %s305_s4 = sadd.s32 2, %s1785_s13 }
  0xff   : > { %s2180_s5 = smov (!%p2113_p0, %s261_s5), %s260_s21  ;;  %p2115_p3 = pmov %p2114_p1 }
 0x100   : > { %s856_s8 = scalar_select %p2114_p1, [#allocation5], [#allocation52] }
 0x101   : > { %p768_p2 = scmp.lt.s32.totalorder %s2180_s5, 0  ;;  %s267_s10 = sadd.s32 2, %s2180_s5 }
 0x102   : > { %s857_s27 = scalar_select %p2115_p3, %s1785_s13, 0 }
 0x103   : > { %s2182_s10 = smov (!%p768_p2, %s267_s10), %s2180_s5  ;;  %p2116_p9 = pmov %p2114_p1 }
 0x104   : > { %s270_s2 = sld [smem:[%s856_s8 + %s857_s27]]  ;;  %s771_s29 = sshll.u32 %s2182_s10, 3 }
 0x105   : > { %s1815_s30 = scalar_lea.vmem [#allocation2], %s771_s29  ;;  %s1825_s8 = scalar_lea.sflag [#allocation3], %s771_s29 }
 0x106   : > { %s283_s12 = sshll.u32 %s1815_s30, 4  ;;  %s640_s22 = scalar_lea.vmem %s1815_s30, 1 [#allocation2]  ;;  %s284_s12 = int_to_ptr.vmem [resolvable:$true] %s283_s12 }
 0x107   : > { %s859_s21 = scalar_select %p2116_p9, [#allocation5], [#allocation53] }
 0x108   : > { %s301_s17 = sshll.u32 %s640_s22, 4  ;;  %p2117_p11 = pmov %p2114_p1  ;;  %s302_s17 = int_to_ptr.vmem [resolvable:$true] %s301_s17 }
 0x10a   : > { %s770_s26 = sshll.u32 %s270_s2, 4 }
 0x10b   : > { %s272_s5 = scalar_lea.hbm %s2092_s1, %s770_s26 }
 0x10c   : > { %s1179_s10 = scalar_lea.hbm %s272_s5, 16  ;;  %p1184_p6 = scmp.lt.s32.totalorder %s272_s5, %s2092_s1 }
 0x10d   : > { %p1180_p10 = scmp.ne.s32.totalorder %s272_s5, %s1179_s10  ;;  %p1185_p8 = scmp.lt.s32.totalorder %s1608_s14, %s1179_s10 }
 0x10f   : > { %p1181_p4 = pnand %p1180_p10, %p2117_p11  ;;  %p1186_p12 = por %p1185_p8, %p1184_p6 }
 0x111   : > { %p1182_p7 = pneg %p1181_p4 }
 0x113   : > { %p1187_p13 = pnand %p1186_p12, %p1182_p7 }
 0x115   : > { %1190 = shalt.err (!%p1187_p13)  }
 0x116   : > { %s1191_s2 = scalar_lea.vmem %s284_s12, 16  ;;  %p1198_p9 = scmp.lt.s32.totalorder %s284_s12, %s1584_s9 }
 0x117   : > { %p1192_p0 = scmp.ne.s32.totalorder %s284_s12, %s1191_s2  ;;  %p1199_p5 = scmp.lt.s32.totalorder %s1619_s28, %s1191_s2 }
 0x119   : > { %p1193_p2 = pnand %p1192_p0, %p2114_p1  ;;  %p1200_p10 = por %p1199_p5, %p1198_p9 }
 0x11b   : > { %p1194_p3 = pneg %p1193_p2 }
 0x11d   : > { %p1201_p11 = pnand %p1200_p10, %p1194_p3 }
 0x11f   : > { %1204 = shalt.err (!%p1201_p11)  }
 0x120   : > { %p2118_p4 = pmov %p2114_p1  ;;  %s2119_s23 = sadd.s32 1, %s1785_s13 }
 0x121   : > { %p2120_p7 = pmov %p2114_p1  ;;  %p2121_p5 = pmov %p2114_p1 }
 0x122   : > { %858 = dma.hbm_to_vmem [thread:$0]  (%p2118_p4), %s272_s5, 16, %s284_s12, %s1825_s8 }
 0x123   : > { %s2184_s23 = smov (!%p2120_p7, %s2119_s23), 0  ;;  %s648_s22 = scalar_lea.vmem %s1815_s30, 2 [#allocation2] }
 0x124   : > { %s862_s29 = scalar_select %p2121_p5, [#allocation5], [#allocation54] }
 0x125   : > { %s288_s11 = sld [smem:[%s859_s21 + %s2184_s23]]  ;;  %p2122_p6 = pmov %p2114_p1 }
 0x126   : > { %s643_s26 = scalar_lea.sflag %s1825_s8, 1 [#allocation3]  ;;  %s319_s6 = sshll.u32 %s648_s22, 4  ;;  %s1853_s6 = int_to_ptr.vmem [resolvable:$true] %s319_s6 }
 0x127   : > { %s2186_s4 = smov (!%p2122_p6, %s305_s4), 0  ;;  %s651_s27 = scalar_lea.sflag %s1825_s8, 2 [#allocation3] }
 0x128   : > { %s1850_s10 = sld [smem:[%s862_s29 + %s2186_s4]]  ;;  %p2123_p8 = pmov %p2114_p1 }
 0x129   : > { %s656_s2 = scalar_lea.vmem %s1815_s30, 3 [#allocation2]  ;;  %p2124_p13 = pmov %p2114_p1 }
 0x12a   : > { %s1857_s12 = scalar_select %p2123_p8, [#allocation5], [#allocation55] }
 0x12b   : > { %s772_s5 = sshll.u32 %s288_s11, 4 }
 0x12c   : > { %s290_s23 = scalar_lea.hbm %s2092_s1, %s772_s5 }
 0x12d   : > { %s1205_s15 = scalar_lea.hbm %s290_s23, 16  ;;  %p1210_p2 = scmp.lt.s32.totalorder %s290_s23, %s2092_s1 }
 0x12e   : > { %p1206_p12 = scmp.ne.s32.totalorder %s290_s23, %s1205_s15  ;;  %p1211_p3 = scmp.lt.s32.totalorder %s1608_s14, %s1205_s15 }
 0x130   : > { %p1207_p0 = pnand %p1206_p12, %p2124_p13  ;;  %p1212_p9 = por %p1211_p3, %p1210_p2 }
 0x132   : > { %p1208_p1 = pneg %p1207_p0 }
 0x134   : > { %p1213_p10 = pnand %p1212_p9, %p1208_p1 }
 0x136   : > { %1216 = shalt.err (!%p1213_p10)  }
 0x137   : > { %s1217_s11 = scalar_lea.vmem %s302_s17, 16  ;;  %p1224_p6 = scmp.lt.s32.totalorder %s302_s17, %s1584_s9 }
 0x138   : > { %p1218_p11 = scmp.ne.s32.totalorder %s302_s17, %s1217_s11  ;;  %p1225_p8 = scmp.lt.s32.totalorder %s1619_s28, %s1217_s11 }
 0x13a   : > { %p1219_p7 = pnand %p1218_p11, %p2118_p4  ;;  %p1226_p12 = por %p1225_p8, %p1224_p6 }
 0x13c   : > { %p1220_p5 = pneg %p1219_p7 }
 0x13e   : > { %p1227_p13 = pnand %p1226_p12, %p1220_p5 }
 0x140   : > { %1230 = shalt.err (!%p1227_p13)  }
 0x141   : > { %p2125_p0 = pmov %p2118_p4  ;;  %s775_s15 = sshll.u32 %s1850_s10, 4 }
 0x142   : > { %s337_s20 = sshll.u32 %s656_s2, 4  ;;  %s308_s21 = scalar_lea.hbm %s2092_s1, %s775_s15  ;;  %s338_s20 = int_to_ptr.vmem [resolvable:$true] %s337_s20 }
 0x143   : > { %861 = dma.hbm_to_vmem [thread:$0]  (%p2125_p0), %s290_s23, 16, %s302_s17, %s643_s26 }
 0x144   : > { %s341_s4 = sadd.s32 4, %s1785_s13  ;;  %s1231_s29 = scalar_lea.hbm %s308_s21, 16 }
 0x145   : > { %p1232_p1 = scmp.ne.s32.totalorder %s308_s21, %s1231_s29  ;;  %p2126_p2 = pmov %p2125_p0 }
 0x146   : > { %p1236_p10 = scmp.lt.s32.totalorder %s308_s21, %s2092_s1  ;;  %p1237_p11 = scmp.lt.s32.totalorder %s1608_s14, %s1231_s29 }
 0x147   : > { %p1233_p3 = pnand %p1232_p1, %p2126_p2 }
 0x148   : > { %p1238_p4 = por %p1237_p11, %p1236_p10 }
 0x149   : > { %p1234_p9 = pneg %p1233_p3 }
 0x14b   : > { %p1239_p7 = pnand %p1238_p4, %p1234_p9 }
 0x14d   : > { %1242 = shalt.err (!%p1239_p7)  }
 0x14e   : > { %s1243_s17 = scalar_lea.vmem %s1853_s6, 16  ;;  %p2127_p6 = pmov %p2125_p0 }
 0x14f   : > { %p1244_p5 = scmp.ne.s32.totalorder %s1853_s6, %s1243_s17  ;;  %p1250_p13 = scmp.lt.s32.totalorder %s1853_s6, %s1584_s9 }
 0x150   : > { %p1251_p0 = scmp.lt.s32.totalorder %s1619_s28, %s1243_s17 }
 0x151   : > { %p1245_p8 = pnand %p1244_p5, %p2127_p6 }
 0x152   : > { %p1252_p1 = por %p1251_p0, %p1250_p13 }
 0x153   : > { %p1246_p12 = pneg %p1245_p8 }
 0x155   : > { %p1253_p2 = pnand %p1252_p1, %p1246_p12 }
 0x157   : > { %1256 = shalt.err (!%p1253_p2)  }
 0x158   : > { %p2128_p3 = pmov %p2127_p6  ;;  %s2129_s25 = sadd.s32 3, %s1785_s13 }
 0x159   : > { %s664_s2 = scalar_lea.vmem %s1815_s30, 4 [#allocation2]  ;;  %s659_s23 = scalar_lea.sflag %s1825_s8, 3 [#allocation3] }
 0x15a   : > { %864 = dma.hbm_to_vmem [thread:$0]  (%p2128_p3), %s308_s21, 16, %s1853_s6, %s651_s27 }
 0x15b   : > { %p2130_p9 = pmov %p2128_p3  ;;  %p2131_p10 = pmov %p2128_p3 }
 0x15c   : > { %p2132_p11 = pmov %p2128_p3  ;;  %s355_s15 = sshll.u32 %s664_s2, 4  ;;  %s1915_s15 = int_to_ptr.vmem [resolvable:$true] %s355_s15 }
 0x15d   : > { %s2188_s25 = smov (!%p2130_p9, %s2129_s25), 0  ;;  %s667_s5 = scalar_lea.sflag %s1825_s8, 4 [#allocation3] }
 0x15e   : > { %s868_s26 = scalar_select %p2131_p10, [#allocation5], [#allocation56] }
 0x15f   : > { %s324_s10 = sld [smem:[%s1857_s12 + %s2188_s25]]  ;;  %s2190_s4 = smov (!%p2132_p11, %s341_s4), 0 }
 0x160   : > { %s1912_s22 = sld [smem:[%s868_s26 + %s2190_s4]]  ;;  %p2133_p4 = pmov %p2128_p3 }
 0x161   : > { %s672_s21 = scalar_lea.vmem %s1815_s30, 5 [#allocation2]  ;;  %p2134_p5 = pmov %p2128_p3 }
 0x162   : > { %s1919_s6 = scalar_select %p2133_p4, [#allocation5], [#allocation57] }
 0x165   : > { %s778_s27 = sshll.u32 %s324_s10, 4 }
 0x166   : > { %s326_s11 = scalar_lea.hbm %s2092_s1, %s778_s27 }
 0x167   : > { %s1257_s25 = scalar_lea.hbm %s326_s11, 16  ;;  %p1262_p12 = scmp.lt.s32.totalorder %s326_s11, %s2092_s1 }
 0x168   : > { %p1258_p7 = scmp.ne.s32.totalorder %s326_s11, %s1257_s25  ;;  %p1263_p13 = scmp.lt.s32.totalorder %s1608_s14, %s1257_s25 }
 0x16a   : > { %p1259_p6 = pnand %p1258_p7, %p2134_p5  ;;  %p1264_p0 = por %p1263_p13, %p1262_p12 }
 0x16c   : > { %p1260_p8 = pneg %p1259_p6 }
 0x16e   : > { %p1265_p1 = pnand %p1264_p0, %p1260_p8 }
 0x170   : > { %1268 = shalt.err (!%p1265_p1)  }
 0x171   : > { %s1269_s10 = scalar_lea.vmem %s338_s20, 16  ;;  %p1276_p11 = scmp.lt.s32.totalorder %s338_s20, %s1584_s9 }
 0x172   : > { %p1270_p2 = scmp.ne.s32.totalorder %s338_s20, %s1269_s10  ;;  %p1277_p4 = scmp.lt.s32.totalorder %s1619_s28, %s1269_s10 }
 0x174   : > { %p1271_p9 = pnand %p1270_p2, %p2128_p3  ;;  %p1278_p7 = por %p1277_p4, %p1276_p11 }
 0x176   : > { %p1272_p10 = pneg %p1271_p9 }
 0x178   : > { %p1279_p5 = pnand %p1278_p7, %p1272_p10 }
 0x17a   : > { %1282 = shalt.err (!%p1279_p5)  }
 0x17b   : > { %p2135_p6 = pmov %p2128_p3  ;;  %s781_s2 = sshll.u32 %s1912_s22, 4 }
 0x17c   : > { %s1941_s27 = sshll.u32 %s672_s21, 4  ;;  %s344_s25 = scalar_lea.hbm %s2092_s1, %s781_s2  ;;  %s374_s27 = int_to_ptr.vmem [resolvable:$true] %s1941_s27 }
 0x17d   : > { %867 = dma.hbm_to_vmem [thread:$0]  (%p2135_p6), %s326_s11, 16, %s338_s20, %s659_s23 }
 0x17e   : > { %s377_s4 = sadd.s32 6, %s1785_s13  ;;  %s1283_s26 = scalar_lea.hbm %s344_s25, 16 }
 0x17f   : > { %p1284_p8 = scmp.ne.s32.totalorder %s344_s25, %s1283_s26  ;;  %p2136_p12 = pmov %p2128_p3 }
 0x180   : > { %p1288_p1 = scmp.lt.s32.totalorder %s344_s25, %s2092_s1  ;;  %p1289_p2 = scmp.lt.s32.totalorder %s1608_s14, %s1283_s26 }
 0x181   : > { %p1285_p13 = pnand %p1284_p8, %p2136_p12 }
 0x182   : > { %p1290_p3 = por %p1289_p2, %p1288_p1 }
 0x183   : > { %p1286_p0 = pneg %p1285_p13 }
 0x185   : > { %p1291_p9 = pnand %p1290_p3, %p1286_p0 }
 0x187   : > { %1294 = shalt.err (!%p1291_p9)  }
 0x188   : > { %s1295_s20 = scalar_lea.vmem %s1915_s15, 16  ;;  %p2137_p11 = pmov %p2135_p6 }
 0x189   : > { %p1296_p10 = scmp.ne.s32.totalorder %s1915_s15, %s1295_s20  ;;  %p1302_p5 = scmp.lt.s32.totalorder %s1915_s15, %s1584_s9 }
 0x18a   : > { %p1303_p6 = scmp.lt.s32.totalorder %s1619_s28, %s1295_s20 }
 0x18b   : > { %p1297_p4 = pnand %p1296_p10, %p2137_p11 }
 0x18c   : > { %p1304_p8 = por %p1303_p6, %p1302_p5 }
 0x18d   : > { %p1298_p7 = pneg %p1297_p4 }
 0x18f   : > { %p1305_p12 = pnand %p1304_p8, %p1298_p7 }
 0x191   : > { %1308 = shalt.err (!%p1305_p12)  }
 0x192   : > { %p2138_p13 = pmov %p2137_p11  ;;  %s2139_s23 = sadd.s32 5, %s1785_s13 }
 0x193   : > { %p2140_p0 = pmov %p2137_p11  ;;  %s680_s11 = scalar_lea.vmem %s1815_s30, 6 [#allocation2] }
 0x194   : > { %870 = dma.hbm_to_vmem [thread:$0]  (%p2138_p13), %s344_s25, 16, %s1915_s15, %s667_s5 }
 0x195   : > { %s2192_s23 = smov (!%p2140_p0, %s2139_s23), 0  ;;  %p2141_p1 = pmov %p2140_p0 }
 0x196   : > { %s360_s21 = sld [smem:[%s1919_s6 + %s2192_s23]]  ;;  %p2142_p2 = pmov %p2140_p0 }
 0x197   : > { %s874_s22 = scalar_select %p2141_p1, [#allocation5], [#allocation58] }
 0x198   : > { %s2194_s4 = smov (!%p2142_p2, %s377_s4), 0  ;;  %s675_s17 = scalar_lea.sflag %s1825_s8, 5 [#allocation3] }
 0x199   : > { %s1976_s2 = sld [smem:[%s874_s22 + %s2194_s4]]  ;;  %s391_s29 = sshll.u32 %s680_s11, 4  ;;  %s1987_s29 = int_to_ptr.vmem [resolvable:$true] %s391_s29 }
 0x19a   : > { %p2143_p3 = pmov %p2140_p0  ;;  %s683_s5 = scalar_lea.sflag %s1825_s8, 6 [#allocation3] }
 0x19b   : > { %p2144_p10 = pmov %p2140_p0 }
 0x19c   : > { %s1981_s12 = scalar_select %p2143_p3, [#allocation5], [#allocation59] }
 0x19d   : > { %s784_s15 = sshll.u32 %s360_s21, 4 }
 0x19e   : > { %s362_s10 = scalar_lea.hbm %s2092_s1, %s784_s15 }
 0x19f   : > { %s1309_s6 = scalar_lea.hbm %s362_s10, 16  ;;  %p1314_p7 = scmp.lt.s32.totalorder %s362_s10, %s2092_s1 }
 0x1a0   : > { %p1310_p9 = scmp.ne.s32.totalorder %s362_s10, %s1309_s6  ;;  %p1315_p5 = scmp.lt.s32.totalorder %s1608_s14, %s1309_s6 }
 0x1a2   : > { %p1311_p11 = pnand %p1310_p9, %p2144_p10  ;;  %p1316_p6 = por %p1315_p5, %p1314_p7 }
 0x1a4   : > { %p1312_p4 = pneg %p1311_p11 }
 0x1a6   : > { %p1317_p8 = pnand %p1316_p6, %p1312_p4 }
 0x1a8   : > { %1320 = shalt.err (!%p1317_p8)  }
 0x1a9   : > { %s1321_s23 = scalar_lea.vmem %s374_s27, 16  ;;  %p2145_p13 = pmov %p2140_p0 }
 0x1aa   : > { %p1322_p12 = scmp.ne.s32.totalorder %s374_s27, %s1321_s23  ;;  %p1328_p2 = scmp.lt.s32.totalorder %s374_s27, %s1584_s9 }
 0x1ab   : > { %p1329_p3 = scmp.lt.s32.totalorder %s1619_s28, %s1321_s23 }
 0x1ac   : > { %p1323_p0 = pnand %p1322_p12, %p2145_p13 }
 0x1ad   : > { %p1330_p9 = por %p1329_p3, %p1328_p2 }
 0x1ae   : > { %p1324_p1 = pneg %p1323_p0 }
 0x1b0   : > { %p1331_p10 = pnand %p1330_p9, %p1324_p1 }
 0x1b2   : > { %1334 = shalt.err (!%p1331_p10)  }
 0x1b3   : > { %p2146_p11 = pmov %p2145_p13  ;;  %s787_s22 = sshll.u32 %s1976_s2, 4 }
 0x1b4   : > { %s395_s21 = sadd.s32 7, %s1785_s13  ;;  %s380_s25 = scalar_lea.hbm %s2092_s1, %s787_s22 }
 0x1b5   : > { %873 = dma.hbm_to_vmem [thread:$0]  (%p2146_p11), %s362_s10, 16, %s374_s27, %s675_s17 }
 0x1b6   : > { %s688_s26 = scalar_lea.vmem %s1815_s30, 7 [#allocation2]  ;;  %s1335_s6 = scalar_lea.hbm %s380_s25, 16 }
 0x1b7   : > { %p1336_p4 = scmp.ne.s32.totalorder %s380_s25, %s1335_s6  ;;  %p2147_p7 = pmov %p2146_p11 }
 0x1b8   : > { %p1340_p8 = scmp.lt.s32.totalorder %s380_s25, %s2092_s1  ;;  %p1341_p12 = scmp.lt.s32.totalorder %s1608_s14, %s1335_s6 }
 0x1b9   : > { %p1337_p5 = pnand %p1336_p4, %p2147_p7 }
 0x1ba   : > { %p1342_p13 = por %p1341_p12, %p1340_p8 }
 0x1bb   : > { %p1338_p6 = pneg %p1337_p5 }
 0x1bd   : > { %p1343_p0 = pnand %p1342_p13, %p1338_p6 }
 0x1bf   : > { %1346 = shalt.err (!%p1343_p0)  }
 0x1c0   : > { %s1347_s13 = scalar_lea.vmem %s1987_s29, 16  ;;  %p2148_p2 = pmov %p2147_p7 }
 0x1c1   : > { %p1348_p1 = scmp.ne.s32.totalorder %s1987_s29, %s1347_s13  ;;  %p1354_p10 = scmp.lt.s32.totalorder %s1987_s29, %s1584_s9 }
 0x1c2   : > { %p1355_p11 = scmp.lt.s32.totalorder %s1619_s28, %s1347_s13 }
 0x1c3   : > { %p1349_p3 = pnand %p1348_p1, %p2148_p2 }
 0x1c4   : > { %p1356_p4 = por %p1355_p11, %p1354_p10 }
 0x1c5   : > { %p1350_p9 = pneg %p1349_p3 }
 0x1c7   : > { %p1357_p7 = pnand %p1356_p4, %p1350_p9 }
 0x1c9   : > { %1360 = shalt.err (!%p1357_p7)  }
 0x1ca   : > { %p2149_p5 = pmov %p2148_p2  ;;  %p2150_p6 = pmov %p2148_p2 }
 0x1cb   : > { %p413_p8 = scmp.lt.s32.totalorder %s1526_s0, 0  ;;  %s414_s30 = ssub.s32 0, %s1526_s0 }
 0x1cc   : > { %876 = dma.hbm_to_vmem [thread:$0]  (%p2149_p5), %s380_s25, 16, %s1987_s29, %s683_s5 }
 0x1cd   : > { %s2196_s21 = smov (!%p2150_p6, %s395_s21), 0  ;;  %s793_s17 = smin.u32 %s1526_s0, %s414_s30 }
 0x1ce   : > { %s396_s27 = sld [smem:[%s1981_s12 + %s2196_s21]]  ;;  %s416_s2 = sand.u32 1, %s793_s17  }
 0x1cf   : > { %s409_s10 = sshll.u32 %s688_s26, 4  ;;  %s417_s23 = ssub.s32 0, %s416_s2  ;;  %s410_s10 = int_to_ptr.vmem [resolvable:$true] %s409_s10 }
 0x1d0   : > { %s2198_s23 = smov (!%p413_p8, %s417_s23), %s416_s2  ;;  %s691_s22 = scalar_lea.sflag %s1825_s8, 7 [#allocation3] }
 0x1d1   : > { %s423_s15 = sadd.s32 2, %s2198_s23  ;;  %p2151_p0 = pmov %p2148_p2 }
 0x1d4   : > { %s790_s11 = sshll.u32 %s396_s27, 4 }
 0x1d5   : > { %s398_s29 = scalar_lea.hbm %s2092_s1, %s790_s11 }
 0x1d6   : > { %s1361_s5 = scalar_lea.hbm %s398_s29, 16  ;;  %p1366_p3 = scmp.lt.s32.totalorder %s398_s29, %s2092_s1 }
 0x1d7   : > { %p1362_p13 = scmp.ne.s32.totalorder %s398_s29, %s1361_s5  ;;  %p1367_p9 = scmp.lt.s32.totalorder %s1608_s14, %s1361_s5 }
 0x1d9   : > { %p1363_p1 = pnand %p1362_p13, %p2151_p0  ;;  %p1368_p10 = por %p1367_p9, %p1366_p3 }
 0x1db   : > { %p1364_p2 = pneg %p1363_p1 }
 0x1dd   : > { %p1369_p11 = pnand %p1368_p10, %p1364_p2 }
 0x1df   : > { %1372 = shalt.err (!%p1369_p11)  }
 0x1e0   : > { %s1373_s8 = scalar_lea.vmem %s410_s10, 16  ;;  %p2152_p7 = pmov %p2151_p0 }
 0x1e1   : > { %p1374_p4 = scmp.ne.s32.totalorder %s410_s10, %s1373_s8  ;;  %p1380_p8 = scmp.lt.s32.totalorder %s410_s10, %s1584_s9 }
 0x1e2   : > { %p1381_p12 = scmp.lt.s32.totalorder %s1619_s28, %s1373_s8 }
 0x1e3   : > { %p1375_p5 = pnand %p1374_p4, %p2152_p7 }
 0x1e4   : > { %p1382_p13 = por %p1381_p12, %p1380_p8 }
 0x1e5   : > { %p1376_p6 = pneg %p1375_p5 }
 0x1e7   : > { %p1383_p0 = pnand %p1382_p13, %p1376_p6 }
 0x1e9   : > { %1386 = shalt.err (!%p1383_p0)  }
 0x1ea   : > { %p2153_p1 = pmov %p2152_p7  ;;  %p2154_p3 = scmp.lt.s32.totalorder %s2198_s23, 0 }
 0x1eb   : > { %s113_s25 = scalar_lea.vmem [#allocation9], %s1577_s7 }
 0x1ec   : > { %879 = dma.hbm_to_vmem [thread:$0]  (%p2153_p1), %s398_s29, 16, %s410_s10, %s691_s22 }
 0x1ed   : > { %s2200_s15 = smov (!%p2154_p3, %s423_s15), %s2198_s23 }
 0x1ee   : > { %s796_s14 = sshll.u32 %s2200_s15, 3 }
 0x1ef   : > { %s426_s26 = scalar_lea.sflag [#allocation3], %s796_s14 }
 0x1f0   : > { %1435 = dma.done.wait %s426_s26, 16 }
 0x1f1   : > { %1436 = vsyncadd %s426_s26, 4294967280  ;;  %s696_s20 = scalar_lea.sflag %s426_s26, 1 [#allocation3] }
 0x1f2   : > { %1437 = dma.done.wait %s696_s20, 16 }
 0x1f3   : > { %1438 = vsyncadd %s696_s20, 4294967280  ;;  %s699_s9 = scalar_lea.sflag %s426_s26, 2 [#allocation3] }
 0x1f4   : > { %1439 = dma.done.wait %s699_s9, 16 }
 0x1f5   : > { %1440 = vsyncadd %s699_s9, 4294967280  ;;  %s702_s28 = scalar_lea.sflag %s426_s26, 3 [#allocation3] }
 0x1f6   : > { %1441 = dma.done.wait %s702_s28, 16 }
 0x1f7   : > { %1442 = vsyncadd %s702_s28, 4294967280  ;;  %s705_s19 = scalar_lea.sflag %s426_s26, 4 [#allocation3] }
 0x1f8   : > { %1443 = dma.done.wait %s705_s19, 16 }
 0x1f9   : > { %1444 = vsyncadd %s705_s19, 4294967280  ;;  %s708_s13 = scalar_lea.sflag %s426_s26, 5 [#allocation3] }
 0x1fa   : > { %1445 = dma.done.wait %s708_s13, 16 }
 0x1fb   : > { %1446 = vsyncadd %s708_s13, 4294967280  ;;  %s711_s30 = scalar_lea.sflag %s426_s26, 6 [#allocation3] }
 0x1fc   : > { %1447 = dma.done.wait %s711_s30, 16 }
 0x1fd   : > { %1448 = vsyncadd %s711_s30, 4294967280  ;;  %s714_s27 = scalar_lea.sflag %s426_s26, 7 [#allocation3] }
 0x1fe   : > { %1449 = dma.done.wait %s714_s27, 16 }
 0x1ff   : > { %1450 = vsyncadd %s714_s27, 4294967280  ;;  %s805_s17 = sshll.u32 %s1526_s0, 7  ;;  %s476_s2 = sshll.u32 %s113_s25, 4  ;;  %v459_v1 = vld [vmem:[#allocation6] sm:$0xff]  ;;  %s477_s2 = int_to_ptr.vmem [resolvable:$true] %s476_s2 }
 0x200   : > { %s457_s10 = scalar_lea.vmem [#allocation2], %s796_s14  ;;  %s474_s11 = scalar_lea.hbm %s2094_s3, %s805_s17 }
 0x201   : > { %v458_v0 = vld [vmem:[%s457_s10] sm:$0xff]  ;;  %s2155_s15 = sand.u32 1, %s1461_s16   ;;  %s1387_s4 = scalar_lea.vmem %s477_s2, 128 }
 0x202   : > { %v460_v2 = vadd.f32 %v459_v1, %v458_v0  ;;  %s463_s6 = scalar_lea.sflag [#allocation8], %s2155_s15  ;;  %p1388_p12 = scmp.ne.s32.totalorder %s477_s2, %s1387_s4 }
 0x203   : > { %p2156_p2 = scmp.ne.s32.totalorder %s2107_s24, 0  ;;  %s1481_s0 = smov [#allocation9]  }
 0x204   : > { %461 = vst [vmem:[%s113_s25] sm:$0xff] %v460_v2  ;;  %s1391_s29 = sshll.u32 %s1481_s0, 4  ;;  %s1392_s29 = int_to_ptr.vmem [resolvable:$false] %s1391_s29 }
 0x205   : > { %p1389_p9 = pnand %p1388_p12, %p2156_p2  ;;  %s1393_s5 = scalar_lea.vmem %s1392_s29, 256 }
 0x206   : > { %p1394_p11 = scmp.lt.s32.totalorder %s477_s2, %s1392_s29  ;;  %p1395_p4 = scmp.lt.s32.totalorder %s1393_s5, %s1387_s4 }
 0x207   : > { %p1390_p10 = pneg %p1389_p9 }
 0x208   : > { %p1396_p7 = por %p1395_p4, %p1394_p11 }
 0x20a   : > { %p1397_p5 = pnand %p1396_p7, %p1390_p10 }
 0x20c   : > { %1400 = shalt.err (!%p1397_p5)
}
 0x20d   : > { %s1401_s12 = scalar_lea.hbm %s474_s11, 128  ;;  %s1405_s8 = scalar_lea.hbm %s2094_s3, 256 }
 0x20e   : > { %p1402_p6 = scmp.ne.s32.totalorder %s474_s11, %s1401_s12  ;;  %p1406_p0 = scmp.lt.s32.totalorder %s474_s11, %s2094_s3 }
 0x20f   : > { %p1407_p1 = scmp.lt.s32.totalorder %s1405_s8, %s1401_s12 }
 0x210   : > { %p1403_p8 = pnand %p1402_p6, %p2156_p2 }
 0x211   : > { %p1408_p3 = por %p1407_p1, %p1406_p0 }
 0x212   : > { %p1404_p13 = pneg %p1403_p8 }
 0x214   : > { %p1409_p12 = pnand %p1408_p3, %p1404_p13 }
 0x216   : > { %1412 = shalt.err (!%p1409_p12)
}
 0x217   : > { %880 = dma.vmem_to_hbm [thread:$0]  (%p2156_p2), %s477_s2, 128, %s474_s11, %s463_s6  }
 0x218 PF: > { %s2157_s26 = sld [smem:[#allocation71_spill]]  ;;  %p894_p9 = scmp.ge.s32.totalorder %s1469_s18, 2 }
 0x219   : > { %s2158_s20 = sld [smem:[#allocation75_spill]] }
 0x21e   : > { %s488_s9 = sand.u32 1, %s2157_s26  }
 0x21f   : > { %p2159_p10 = scmp.ne.s32.totalorder %s2158_s20, 0  ;;  %s489_s28 = scalar_lea.sflag [#allocation8], %s488_s9 }
 0x221   : > { %p887_p11 = pnand %p894_p9, %p2159_p10 }
 0x223   : > { %p888_p4 = pneg %p887_p11 }
 0x225   : > { %1452 = dma.done.wait (%p888_p4), %s489_s28, 128  }
 0x226   : > { %1454 = vsyncadd (%p888_p4), %s489_s28, 4294967168  ;;  %s2160_s18 = sld [smem:[#allocation73_spill]]  ;;  %s2163_s15 = smov %s1461_s16 }
 0x227   : > { %s2161_s19 = sld [smem:[#allocation72_spill]] }
 0x228   : > { %s2162_s17 = sld [smem:[#allocation74_spill]] }
 0x22c   : > { %p18_p7 = scmp.ge.s32.totalorder %s2160_s18, 4  }
 0x22d   : > { %s2164_s16 = smov %s2161_s19 }
 0x22e   :  { %20 = sbr.rel (!%p18_p7) target bundleno = 10 (0xa), region = 203 }
 0x233   :  { %494 = vsyncpa [#allocation7], 1 }
 0x234   :  { %496 = vsyncpa [#allocation7 + $0x1], 1 }
 0x235   :  { %497 = vsyncpa [#allocation8], 1 }
 0x236   :  { %499 = vsyncpa [#allocation8 + $0x1], 1 }
 0x237   :  { %500 = vsyncmov [#allocation3] }
 0x23a   :  { %s501_s24 = vpop.sfrf %500 }
 0x23b   :  { %p808_p2 = scmp.ne.s32.totalorder %s501_s24, 0 }
 0x23d   :  { %505 = shalt.err (%p808_p2)  }
 0x23e   :  { %507 = vsyncmov [#allocation3 + $0x1] }
 0x241   :  { %s508_s13 = vpop.sfrf %507 }
 0x242   :  { %p809_p5 = scmp.ne.s32.totalorder %s508_s13, 0 }
 0x244   :  { %512 = shalt.err (%p809_p5)  }
 0x245   :  { %514 = vsyncmov [#allocation3 + $0x2] }
 0x248   :  { %s515_s30 = vpop.sfrf %514 }
 0x249   :  { %p810_p6 = scmp.ne.s32.totalorder %s515_s30, 0 }
 0x24b   :  { %519 = shalt.err (%p810_p6)  }
 0x24c   :  { %521 = vsyncmov [#allocation3 + $0x3] }
 0x24f   :  { %s522_s27 = vpop.sfrf %521 }
 0x250   :  { %p811_p8 = scmp.ne.s32.totalorder %s522_s27, 0 }
 0x252   :  { %526 = shalt.err (%p811_p8)  }
 0x253   :  { %528 = vsyncmov [#allocation3 + $0x4] }
 0x256   :  { %s529_s1 = vpop.sfrf %528 }
 0x257   :  { %p812_p13 = scmp.ne.s32.totalorder %s529_s1, 0 }
 0x259   :  { %533 = shalt.err (%p812_p13)  }
 0x25a   :  { %535 = vsyncmov [#allocation3 + $0x5] }
 0x25d   :  { %s536_s3 = vpop.sfrf %535 }
 0x25e   :  { %p813_p0 = scmp.ne.s32.totalorder %s536_s3, 0 }
 0x260   :  { %540 = shalt.err (%p813_p0)  }
 0x261   :  { %542 = vsyncmov [#allocation3 + $0x6] }
 0x264   :  { %s543_s16 = vpop.sfrf %542 }
 0x265   :  { %p814_p1 = scmp.ne.s32.totalorder %s543_s16, 0 }
 0x267   :  { %547 = shalt.err (%p814_p1)  }
 0x268   :  { %549 = vsyncmov [#allocation3 + $0x7] }
 0x26b   :  { %s550_s18 = vpop.sfrf %549 }
 0x26c   :  { %p815_p3 = scmp.ne.s32.totalorder %s550_s18, 0 }
 0x26e   :  { %554 = shalt.err (%p815_p3)  }
 0x26f   :  { %556 = vsyncmov [#allocation3 + $0x8] }
 0x272   :  { %s557_s17 = vpop.sfrf %556 }
 0x273   :  { %p816_p12 = scmp.ne.s32.totalorder %s557_s17, 0 }
 0x275   :  { %561 = shalt.err (%p816_p12)  }
 0x276   :  { %563 = vsyncmov [#allocation3 + $0x9] }
 0x279   :  { %s564_s2 = vpop.sfrf %563 }
 0x27a   :  { %p817_p9 = scmp.ne.s32.totalorder %s564_s2, 0 }
 0x27c   :  { %568 = shalt.err (%p817_p9)  }
 0x27d   :  { %570 = vsyncmov [#allocation3 + $0xa] }
 0x280   :  { %s571_s10 = vpop.sfrf %570 }
 0x281   :  { %p818_p10 = scmp.ne.s32.totalorder %s571_s10, 0 }
 0x283   :  { %575 = shalt.err (%p818_p10)  }
 0x284   :  { %577 = vsyncmov [#allocation3 + $0xb] }
 0x287   :  { %s578_s23 = vpop.sfrf %577 }
 0x288   :  { %p819_p11 = scmp.ne.s32.totalorder %s578_s23, 0 }
 0x28a   :  { %582 = shalt.err (%p819_p11)  }
 0x28b   :  { %584 = vsyncmov [#allocation3 + $0xc] }
 0x28e   :  { %s585_s22 = vpop.sfrf %584 }
 0x28f   :  { %p820_p4 = scmp.ne.s32.totalorder %s585_s22, 0 }
 0x291   :  { %589 = shalt.err (%p820_p4)  }
 0x292   :  { %591 = vsyncmov [#allocation3 + $0xd] }
 0x295   :  { %s592_s11 = vpop.sfrf %591 }
 0x296   :  { %p821_p7 = scmp.ne.s32.totalorder %s592_s11, 0 }
 0x298   :  { %596 = shalt.err (%p821_p7)  }
 0x299   :  { %598 = vsyncmov [#allocation3 + $0xe] }
 0x29c   :  { %s599_s15 = vpop.sfrf %598 }
 0x29d   :  { %p822_p2 = scmp.ne.s32.totalorder %s599_s15, 0 }
 0x29f   :  { %603 = shalt.err (%p822_p2)  }
 0x2a0   :  { %605 = vsyncmov [#allocation3 + $0xf] }
 0x2a3   :  { %s606_s6 = vpop.sfrf %605 }
 0x2a4   :  { %p823_p5 = scmp.ne.s32.totalorder %s606_s6, 0 }
 0x2a6   :  { %610 = shalt.err (%p823_p5)  }

</bundles_post_ra>
